<compile_context>
chip_gen: v7x
topology: tpu7x:2x2x1
jax: 0.10.0
libtpu: 0.0.40
codegen_flags: <defaults>
</compile_context>

<pallas_src>
import functools

import numpy as np
import jax
import jax.numpy as jnp
from jax.experimental import pallas as pl
from jax.experimental.pallas import tpu as pltpu

LANE = 128


def _round_up(v, m):
    return ((v + m - 1) // m) * m


def _pad2(a, rows, cols):
    return jnp.pad(a, ((0, rows - a.shape[0]), (0, cols - a.shape[1])))


def _gelu_tanh(x):
    c = 0.7978845608028654  # sqrt(2/pi)
    return 0.5 * x * (1.0 + jnp.tanh(c * (x + 0.044715 * x * x * x)))


def connectome_kernel(node_hidden, p_pad,
                      x_ref, srow_ref, gcolw_ref, pool_ref, dinv_ref,
                      wn_ref, bn_ref,
                      w0_ref, b0_ref, g0_ref, bt0_ref,
                      w1_ref, b1_ref,
                      out_ref,
                      z_ref, agg_ref):
    """Grid = (phase, edge_tile).

    phase 0: z = dinv*(h0 @ W0)   (h0 = node embedding), agg accumulates
             layer-0 neighbor messages over the edge tiles.
    phase 1: finish layer 0 (GELU + LayerNorm), z = dinv*(h1 @ W1), agg
             accumulates layer-1 messages; last edge tile writes pooled out.
    """
    f32 = jnp.float32
    bf16 = jnp.bfloat16
    p = pl.program_id(0)       # phase (GCN layer)
    e = pl.program_id(1)       # edge tile
    n_e = pl.num_programs(1)

    # ---------------- phase entries (run before this step's aggregation) -----
    @pl.when((p == 0) & (e == 0))
    def _start_layer0():
        dinv = dinv_ref[...]                                           # [N,1]
        h0 = jnp.dot(x_ref[...], wn_ref[...],
                     preferred_element_type=f32) + bn_ref[...]         # [N,P]
        hw0 = jnp.dot(h0.astype(bf16), w0_ref[...],
                      preferred_element_type=f32)
        z_ref[...] = (dinv * hw0).astype(bf16)
        agg_ref[...] = jnp.zeros_like(agg_ref)

    @pl.when((p == 1) & (e == 0))
    def _start_layer1():
        dinv = dinv_ref[...]
        # finish layer 0: dinv*agg (neighbors) + dinv*z (self loop) + b0
        h1 = dinv * agg_ref[...] + dinv * z_ref[...].astype(f32) + b0_ref[...]
        h1 = _gelu_tanh(h1)
        # LayerNorm over the TRUE node_hidden lanes.  Padded lanes of h1 are
        # exactly zero, so the centered variance over the true lanes is
        #   (sum_all (h-mu)^2 - (P-H)*mu^2) / H      (exact correction).
        inv_h = 1.0 / node_hidden
        mu = jnp.sum(h1, axis=-1, keepdims=True) * inv_h
        d = h1 - mu
        var = (jnp.sum(d * d, axis=-1, keepdims=True)
               - float(p_pad - node_hidden) * mu * mu) * inv_h
        h1 = d * jax.lax.rsqrt(var + 1e-5) * g0_ref[...] + bt0_ref[...]
        hw1 = jnp.dot(h1.astype(bf16), w1_ref[...],
                      preferred_element_type=f32)
        z_ref[...] = (dinv * hw1).astype(bf16)
        agg_ref[...] = jnp.zeros_like(agg_ref)

    # ---------------- incidence-form message passing (every grid step) -------
    #   agg += srow[:, tile] @ (gcol_w[tile, :] @ z)
    # gcol_w already carries the per-edge scalar weight; z already carries the
    # source-side dinv; srow is a plain 0/1 dst incidence.
    m = jnp.dot(gcolw_ref[...], z_ref[...], preferred_element_type=f32)  # [tE,P]
    agg_ref[...] += jnp.dot(srow_ref[...], m.astype(bf16),
                            preferred_element_type=f32)                 # [N,P]

    # ---------------- final step: layer-1 output + mean pooling --------------
    @pl.when((p == 1) & (e == n_e - 1))
    def _finalize():
        dinv = dinv_ref[...]
        hout = dinv * agg_ref[...] + dinv * z_ref[...].astype(f32) + b1_ref[...]
        out_ref[...] = jnp.dot(pool_ref[...], hout,
                               preferred_element_type=jnp.float32)       # [G,P]


def connectome_encoder_forward(x, edge_attr, edge_index, freqband_order, params,
                               *, batch, num_freqband,
                               tile_e=None, n_align=LANE):
    """Plain-JAX glue (edge weights, degree, incidence, padding) + pallas_call."""
    f32, bf16 = jnp.float32, jnp.bfloat16
    N, Fn = x.shape
    E, _ = edge_attr.shape
    H = params["w0"].shape[0]          # node_hidden
    Do = params["w1"].shape[1]         # out_features
    G = batch * num_freqband

    # ---- hoisted edge embedding -> scalar edge weight, weighted degree ------
    src, dst = edge_index[0], edge_index[1]
    eemb = edge_attr.astype(f32) @ params["we"] + params["be"]
    w_e = jnp.abs(jnp.mean(eemb, axis=-1))                        # [E] >= 0
    deg = 1.0 + jnp.zeros((N,), f32).at[dst].add(w_e)             # self loop + weighted in-degree
    dinv = jax.lax.rsqrt(deg)                                     # [N]

    # ---- lane-dense padded sizes --------------------------------------------
    # n_align=256 is marginally better on v6e/v7x MXUs when VMEM allows.
    N_p = _round_up(N, n_align)
    Fn_p = _round_up(Fn, LANE)
    P = max(_round_up(H, LANE), _round_up(Do, LANE))   # shared hidden/output width
    G_p = _round_up(G, 8)
    if tile_e is None:
        tile_e = min(1024, _round_up(E, LANE))         # single tile at small E
    E_p = _round_up(E, tile_e)
    n_e = E_p // tile_e

    # ---- incidence matrices (w_e folded into the source side) ---------------
    edge_ids = jnp.arange(E)
    # padded node rows / padded edge rows are all-zero => contribute nothing.
    srow = jnp.zeros((N_p, E_p), f32).at[dst, edge_ids].set(1.0)      # dst incidence
    gcol_w = jnp.zeros((E_p, N_p), f32).at[edge_ids, src].set(w_e)    # src incidence * w_e
    srow_b = srow.astype(bf16)
    gcolw_b = gcol_w.astype(bf16)

    # scatter(..., reduce='mean') as a pooling matrix — kept f32
    onehot_g = jax.nn.one_hot(freqband_order, G, dtype=f32)           # [N, G]
    counts = jnp.maximum(onehot_g.sum(axis=0), 1.0)
    pool = _pad2((onehot_g / counts[None, :]).T, G_p, N_p)            # [G_p, N_p]

    dinv_p = _pad2(dinv[:, None], N_p, 1)                             # [N_p, 1]

    # ---- pad + cast operands -------------------------------------------------
    x_p = _pad2(x, N_p, Fn_p).astype(bf16)
    wn = _pad2(params["wn"], Fn_p, P).astype(bf16)
    bn = _pad2(params["bn"], 1, P).astype(f32)
    w0 = _pad2(params["w0"], P, P).astype(bf16)
    b0 = _pad2(params["b0"], 1, P).astype(f32)
    g0 = _pad2(params["g0"], 1, P).astype(f32)
    bt0 = _pad2(params["bt0"], 1, P).astype(f32)
    w1 = _pad2(params["w1"], P, P).astype(bf16)
    b1 = _pad2(params["b1"], 1, P).astype(f32)

    const = lambda p, e: (0, 0)   # resident operands (block index never changes)

    grid_spec = pltpu.PrefetchScalarGridSpec(
        num_scalar_prefetch=0,
        grid=(2, n_e),            # (GCN layer, edge tile)
        in_specs=[
            pl.BlockSpec((N_p, Fn_p), const),                        # x
            pl.BlockSpec((N_p, tile_e), lambda p, e: (0, e)),        # srow column tile
            pl.BlockSpec((tile_e, N_p), lambda p, e: (e, 0)),        # gcol_w row tile
            pl.BlockSpec((G_p, N_p), const),                         # pooling matrix
            pl.BlockSpec((N_p, 1), const),                           # dinv
            pl.BlockSpec((Fn_p, P), const),                          # wn
            pl.BlockSpec((1, P), const),                             # bn
            pl.BlockSpec((P, P), const),                             # w0
            pl.BlockSpec((1, P), const),                             # b0
            pl.BlockSpec((1, P), const),                             # g0
            pl.BlockSpec((1, P), const),                             # bt0
            pl.BlockSpec((P, P), const),                             # w1
            pl.BlockSpec((1, P), const),                             # b1
        ],
        out_specs=pl.BlockSpec((G_p, P), const),
        scratch_shapes=[
            pltpu.VMEM((N_p, P), bf16),   # z   : dinv-scaled per-layer features
            pltpu.VMEM((N_p, P), f32),    # agg : neighbor-aggregation accumulator
        ],
    )

    # ---- VMEM budget from the actual padded footprint (v7x-safe cap) --------
    def nb(shape, dt):
        return int(np.prod(shape)) * jnp.dtype(dt).itemsize
    block_bytes = (
        nb((N_p, Fn_p), bf16) + nb((N_p, tile_e), bf16) + nb((tile_e, N_p), bf16)
        + nb((G_p, N_p), f32) + nb((N_p, 1), f32)
        + nb((Fn_p, P), bf16) + 2 * nb((P, P), bf16) + 5 * nb((1, P), f32)
        + nb((G_p, P), f32))
    scratch_bytes = nb((N_p, P), bf16) + nb((N_p, P), f32)
    vmem_est = 2 * block_bytes + scratch_bytes          # 2x for double buffering
    vmem_limit = int(min(max(2 * vmem_est + (4 << 20), 8 << 20), 48 << 20))

    kernel = functools.partial(connectome_kernel, H, P)
    out = pl.pallas_call(
        kernel,
        out_shape=jax.ShapeDtypeStruct((G_p, P), f32),
        grid_spec=grid_spec,
        compiler_params=pltpu.CompilerParams(
            # Layer axis is strictly sequential; edge axis is a reduction into
            # shared scratch -> both "arbitrary".
            dimension_semantics=("arbitrary", "arbitrary"),
            vmem_limit_bytes=vmem_limit,
        ),
    )(x_p, srow_b, gcolw_b, pool, dinv_p,
      wn, bn, w0, b0, g0, bt0, w1, b1)

    # drop padding; dropout is identity at inference
    return out[:G, :Do].reshape(batch, num_freqband, Do)


def init_params(key, node_in, edge_in, node_hidden, edge_hidden, out_features):
    ks = jax.random.split(key, 8)
    s = 0.1
    return {
        "wn": s * jax.random.normal(ks[0], (node_in, node_hidden), jnp.float32),
        "bn": s * jax.random.normal(ks[1], (1, node_hidden), jnp.float32),
        "we": s * jax.random.normal(ks[2], (edge_in, edge_hidden), jnp.float32),
        "be": s * jax.random.normal(ks[3], (1, edge_hidden), jnp.float32),
        "w0": s * jax.random.normal(ks[4], (node_hidden, node_hidden), jnp.float32),
        "b0": s * jax.random.normal(ks[5], (1, node_hidden), jnp.float32),
        "g0": jnp.ones((1, node_hidden), jnp.float32),
        "bt0": jnp.zeros((1, node_hidden), jnp.float32),
        "w1": s * jax.random.normal(ks[6], (node_hidden, out_features), jnp.float32),
        "b1": s * jax.random.normal(ks[7], (1, out_features), jnp.float32),
    }


def reference_forward(x, edge_attr, edge_index, freqband_order, params,
                      *, batch, num_freqband):
    """Pure-JAX f32 reference of the same math (dense adjacency)."""
    f32 = jnp.float32
    N = x.shape[0]
    src, dst = edge_index[0], edge_index[1]

    h = x @ params["wn"] + params["bn"]
    eemb = edge_attr @ params["we"] + params["be"]
    w_e = jnp.abs(jnp.mean(eemb, axis=-1))                        # [E]

    A = jnp.zeros((N, N), f32).at[dst, src].add(w_e)
    deg = 1.0 + A.sum(axis=1)
    dinv = jax.lax.rsqrt(deg)
    A_hat = dinv[:, None] * A * dinv[None, :]
    self_w = (dinv * dinv)[:, None]

    def gcn(h, W, b):
        hw = h @ W
        return A_hat @ hw + self_w * hw + b

    h = gcn(h, params["w0"], params["b0"])
    h = _gelu_tanh(h)
    mu = h.mean(-1, keepdims=True)
    var = ((h - mu) ** 2).mean(-1, keepdims=True)
    h = (h - mu) * jax.lax.rsqrt(var + 1e-5) * params["g0"] + params["bt0"]
    h = gcn(h, params["w1"], params["b1"])

    G = batch * num_freqband
    onehot_g = jax.nn.one_hot(freqband_order, G, dtype=f32)
    counts = jnp.maximum(onehot_g.sum(axis=0), 1.0)
    pooled = (onehot_g.T @ h) / counts[:, None]
    return pooled.reshape(batch, num_freqband, -1)


if __name__ == "__main__":
    # batch=2 graphs x 4 frequency bands x 8 brain regions -> N = 64 nodes, E = 256 edges
    batch = 2
    num_freqband = 4
    n_regions = 8
    N = batch * num_freqband * n_regions
    E = 256

    node_in, edge_in = 16, 8
    node_hidden, edge_hidden = 32, 16
    out_features = 32

    key = jax.random.PRNGKey(0)
    k_x, k_ea, k_src, k_dst, k_p = jax.random.split(key, 5)

    x = jax.random.normal(k_x, (N, node_in), jnp.float32)
    edge_attr = jax.random.normal(k_ea, (E, edge_in), jnp.float32)
    src = jax.random.randint(k_src, (E,), 0, N, dtype=jnp.int32)
    dst = jax.random.randint(k_dst, (E,), 0, N, dtype=jnp.int32)
    edge_index = jnp.stack([src, dst], axis=0)                    # [2, E]
    freqband_order = (jnp.arange(N, dtype=jnp.int32) // n_regions)

    params = init_params(k_p, node_in, edge_in, node_hidden, edge_hidden,
                         out_features)

    out = connectome_encoder_forward(
        x, edge_attr, edge_index, freqband_order, params,
        batch=batch, num_freqband=num_freqband)
    out = jax.block_until_ready(out)

    assert out.shape == (batch, num_freqband, out_features)
    assert bool(jnp.all(jnp.isfinite(out)))

    ref = reference_forward(x, edge_attr, edge_index, freqband_order, params,
                            batch=batch, num_freqband=num_freqband)
    np.testing.assert_allclose(np.asarray(out), np.asarray(ref),
                               rtol=5e-2, atol=5e-2)
    print("KERNEL_OK")
</pallas_src>

<mosaic_0001>
module attributes {stable_mosaic.version = 11 : i64} {
  func.func @connectome_kernel(%arg0: i32, %arg1: i32, %arg2: memref<128x128xbf16, #tpu.memory_space<vmem>>, %arg3: memref<128x256xbf16, #tpu.memory_space<vmem>>, %arg4: memref<256x128xbf16, #tpu.memory_space<vmem>>, %arg5: memref<8x128xf32, #tpu.memory_space<vmem>>, %arg6: memref<128x1xf32, #tpu.memory_space<vmem>>, %arg7: memref<128x128xbf16, #tpu.memory_space<vmem>>, %arg8: memref<1x128xf32, #tpu.memory_space<vmem>>, %arg9: memref<128x128xbf16, #tpu.memory_space<vmem>>, %arg10: memref<1x128xf32, #tpu.memory_space<vmem>>, %arg11: memref<1x128xf32, #tpu.memory_space<vmem>>, %arg12: memref<1x128xf32, #tpu.memory_space<vmem>>, %arg13: memref<128x128xbf16, #tpu.memory_space<vmem>>, %arg14: memref<1x128xf32, #tpu.memory_space<vmem>>, %arg15: memref<8x128xf32, #tpu.memory_space<vmem>>, %arg16: memref<128x128xbf16, #tpu.memory_space<vmem>>, %arg17: memref<128x128xf32, #tpu.memory_space<vmem>>) attributes {dimension_semantics = [#tpu.dimension_semantics<arbitrary>, #tpu.dimension_semantics<arbitrary>], iteration_bounds = array<i64: 2, 1>, scalar_prefetch = 0 : i64, scratch_operands = 2 : i64, tpu.core_type = #tpu.core_type<tc>, window_params = [{pipeline_mode = #tpu.pipeline_mode<synchronous>, transform_indices = @transform_0, window_bounds = array<i64: 128, 128>}, {transform_indices = @transform_1, window_bounds = array<i64: 128, 256>}, {transform_indices = @transform_2, window_bounds = array<i64: 256, 128>}, {pipeline_mode = #tpu.pipeline_mode<synchronous>, transform_indices = @transform_3, window_bounds = array<i64: 8, 128>}, {pipeline_mode = #tpu.pipeline_mode<synchronous>, transform_indices = @transform_4, window_bounds = array<i64: 128, 1>}, {pipeline_mode = #tpu.pipeline_mode<synchronous>, transform_indices = @transform_5, window_bounds = array<i64: 128, 128>}, {pipeline_mode = #tpu.pipeline_mode<synchronous>, transform_indices = @transform_6, window_bounds = array<i64: 1, 128>}, {pipeline_mode = #tpu.pipeline_mode<synchronous>, transform_indices = @transform_7, window_bounds = array<i64: 128, 128>}, {pipeline_mode = #tpu.pipeline_mode<synchronous>, transform_indices = @transform_8, window_bounds = array<i64: 1, 128>}, {pipeline_mode = #tpu.pipeline_mode<synchronous>, transform_indices = @transform_9, window_bounds = array<i64: 1, 128>}, {pipeline_mode = #tpu.pipeline_mode<synchronous>, transform_indices = @transform_10, window_bounds = array<i64: 1, 128>}, {pipeline_mode = #tpu.pipeline_mode<synchronous>, transform_indices = @transform_11, window_bounds = array<i64: 128, 128>}, {pipeline_mode = #tpu.pipeline_mode<synchronous>, transform_indices = @transform_12, window_bounds = array<i64: 1, 128>}, {pipeline_mode = #tpu.pipeline_mode<synchronous>, transform_indices = @transform_13, window_bounds = array<i64: 8, 128>}]} {
    %c0_i32 = arith.constant 0 : i32
    %0 = arith.cmpi eq, %arg0, %c0_i32 : i32
    %c0_i32_0 = arith.constant 0 : i32
    %1 = arith.cmpi eq, %arg1, %c0_i32_0 : i32
    %2 = arith.andi %0, %1 : i1
    %3 = arith.extui %2 : i1 to i32
    %c0_i32_1 = arith.constant 0 : i32
    %4 = arith.cmpi ne, %3, %c0_i32_1 : i32
    scf.if %4 {
      %c0_17 = arith.constant 0 : index
      %c0_18 = arith.constant 0 : index
      %24 = vector.load %arg6[%c0_17, %c0_18] : memref<128x1xf32, #tpu.memory_space<vmem>>, vector<128x1xf32>
      %c0_19 = arith.constant 0 : index
      %c0_20 = arith.constant 0 : index
      %25 = vector.load %arg2[%c0_19, %c0_20] : memref<128x128xbf16, #tpu.memory_space<vmem>>, vector<128x128xbf16>
      %c0_21 = arith.constant 0 : index
      %c0_22 = arith.constant 0 : index
      %26 = vector.load %arg7[%c0_21, %c0_22] : memref<128x128xbf16, #tpu.memory_space<vmem>>, vector<128x128xbf16>
      %cst_23 = arith.constant dense<0.000000e+00> : vector<128x128xf32>
      %27 = tpu.matmul %25, %26, %cst_23 {dimension_numbers = #tpu.dot_dimension_numbers<[1], [0], [0], [1], [0, 0, 1, 1], [], []>} : vector<128x128xbf16>, vector<128x128xbf16>, vector<128x128xf32> -> vector<128x128xf32>
      %c0_24 = arith.constant 0 : index
      %c0_25 = arith.constant 0 : index
      %28 = vector.load %arg8[%c0_24, %c0_25] : memref<1x128xf32, #tpu.memory_space<vmem>>, vector<1x128xf32>
      %29 = vector.broadcast %28 : vector<1x128xf32> to vector<128x128xf32>
      %30 = arith.addf %27, %29 : vector<128x128xf32>
      %31 = arith.truncf %30 : vector<128x128xf32> to vector<128x128xbf16>
      %c0_26 = arith.constant 0 : index
      %c0_27 = arith.constant 0 : index
      %32 = vector.load %arg9[%c0_26, %c0_27] : memref<128x128xbf16, #tpu.memory_space<vmem>>, vector<128x128xbf16>
      %cst_28 = arith.constant dense<0.000000e+00> : vector<128x128xf32>
      %33 = tpu.matmul %31, %32, %cst_28 {dimension_numbers = #tpu.dot_dimension_numbers<[1], [0], [0], [1], [0, 0, 1, 1], [], []>} : vector<128x128xbf16>, vector<128x128xbf16>, vector<128x128xf32> -> vector<128x128xf32>
      %34 = vector.broadcast %24 : vector<128x1xf32> to vector<128x128xf32>
      %35 = arith.mulf %34, %33 : vector<128x128xf32>
      %36 = arith.truncf %35 : vector<128x128xf32> to vector<128x128xbf16>
      %c0_29 = arith.constant 0 : index
      %c0_30 = arith.constant 0 : index
      %37 = vector.load %arg16[%c0_29, %c0_30] : memref<128x128xbf16, #tpu.memory_space<vmem>>, vector<128x128xbf16>
      tpu.vector_store %arg16[%c0_29, %c0_30], %36 {strides = array<i32>} : memref<128x128xbf16, #tpu.memory_space<vmem>>, vector<128x128xbf16>,
      %cst_31 = arith.constant 0.000000e+00 : f32
      %38 = vector.broadcast %cst_31 : f32 to vector<128x128xf32>
      %c0_32 = arith.constant 0 : index
      %c0_33 = arith.constant 0 : index
      %39 = vector.load %arg17[%c0_32, %c0_33] : memref<128x128xf32, #tpu.memory_space<vmem>>, vector<128x128xf32>
      tpu.vector_store %arg17[%c0_32, %c0_33], %38 {strides = array<i32>} : memref<128x128xf32, #tpu.memory_space<vmem>>, vector<128x128xf32>,
    } else {
    }
    %c1_i32 = arith.constant 1 : i32
    %5 = arith.cmpi eq, %arg0, %c1_i32 : i32
    %c0_i32_2 = arith.constant 0 : i32
    %6 = arith.cmpi eq, %arg1, %c0_i32_2 : i32
    %7 = arith.andi %5, %6 : i1
    %8 = arith.extui %7 : i1 to i32
    %c0_i32_3 = arith.constant 0 : i32
    %9 = arith.cmpi ne, %8, %c0_i32_3 : i32
    scf.if %9 {
      %c0_17 = arith.constant 0 : index
      %c0_18 = arith.constant 0 : index
      %24 = vector.load %arg6[%c0_17, %c0_18] : memref<128x1xf32, #tpu.memory_space<vmem>>, vector<128x1xf32>
      %c0_19 = arith.constant 0 : index
      %c0_20 = arith.constant 0 : index
      %25 = vector.load %arg17[%c0_19, %c0_20] : memref<128x128xf32, #tpu.memory_space<vmem>>, vector<128x128xf32>
      %26 = vector.broadcast %24 : vector<128x1xf32> to vector<128x128xf32>
      %27 = arith.mulf %26, %25 : vector<128x128xf32>
      %c0_21 = arith.constant 0 : index
      %c0_22 = arith.constant 0 : index
      %28 = vector.load %arg16[%c0_21, %c0_22] : memref<128x128xbf16, #tpu.memory_space<vmem>>, vector<128x128xbf16>
      %29 = arith.extf %28 : vector<128x128xbf16> to vector<128x128xf32>
      %30 = vector.broadcast %24 : vector<128x1xf32> to vector<128x128xf32>
      %31 = arith.mulf %30, %29 : vector<128x128xf32>
      %32 = arith.addf %27, %31 : vector<128x128xf32>
      %c0_23 = arith.constant 0 : index
      %c0_24 = arith.constant 0 : index
      %33 = vector.load %arg10[%c0_23, %c0_24] : memref<1x128xf32, #tpu.memory_space<vmem>>, vector<1x128xf32>
      %34 = vector.broadcast %33 : vector<1x128xf32> to vector<128x128xf32>
      %35 = arith.addf %32, %34 : vector<128x128xf32>
      %cst_25 = arith.constant 5.000000e-01 : f32
      %36 = vector.broadcast %cst_25 : f32 to vector<128x128xf32>
      %37 = arith.mulf %36, %35 : vector<128x128xf32>
      %cst_26 = arith.constant 4.471500e-02 : f32
      %38 = vector.broadcast %cst_26 : f32 to vector<128x128xf32>
      %39 = arith.mulf %38, %35 : vector<128x128xf32>
      %40 = arith.mulf %39, %35 : vector<128x128xf32>
      %41 = arith.mulf %40, %35 : vector<128x128xf32>
      %42 = arith.addf %35, %41 : vector<128x128xf32>
      %cst_27 = arith.constant 0.797884583 : f32
      %43 = vector.broadcast %cst_27 : f32 to vector<128x128xf32>
      %44 = arith.mulf %43, %42 : vector<128x128xf32>
      %45 = math.tanh %44 : vector<128x128xf32>
      %cst_28 = arith.constant 1.000000e+00 : f32
      %46 = vector.broadcast %cst_28 : f32 to vector<128x128xf32>
      %47 = arith.addf %46, %45 : vector<128x128xf32>
      %48 = arith.mulf %37, %47 : vector<128x128xf32>
      %cst_29 = arith.constant dense<0.000000e+00> : vector<128xf32>
      %49 = vector.multi_reduction <add>, %48, %cst_29 [1] : vector<128x128xf32> to vector<128xf32>
      %50 = vector.shape_cast %49 : vector<128xf32> to vector<128x1xf32>
      %cst_30 = arith.constant 3.125000e-02 : f32
      %51 = vector.broadcast %cst_30 : f32 to vector<128x1xf32>
      %52 = arith.mulf %50, %51 : vector<128x1xf32>
      %53 = vector.broadcast %52 : vector<128x1xf32> to vector<128x128xf32>
      %54 = arith.subf %48, %53 : vector<128x128xf32>
      %55 = arith.mulf %54, %54 : vector<128x128xf32>
      %cst_31 = arith.constant dense<0.000000e+00> : vector<128xf32>
      %56 = vector.multi_reduction <add>, %55, %cst_31 [1] : vector<128x128xf32> to vector<128xf32>
      %57 = vector.shape_cast %56 : vector<128xf32> to vector<128x1xf32>
      %cst_32 = arith.constant 9.600000e+01 : f32
      %58 = vector.broadcast %cst_32 : f32 to vector<128x1xf32>
      %59 = arith.mulf %58, %52 : vector<128x1xf32>
      %60 = arith.mulf %59, %52 : vector<128x1xf32>
      %61 = arith.subf %57, %60 : vector<128x1xf32>
      %cst_33 = arith.constant 3.125000e-02 : f32
      %62 = vector.broadcast %cst_33 : f32 to vector<128x1xf32>
      %63 = arith.mulf %61, %62 : vector<128x1xf32>
      %cst_34 = arith.constant 9.99999974E-6 : f32
      %64 = vector.broadcast %cst_34 : f32 to vector<128x1xf32>
      %65 = arith.addf %63, %64 : vector<128x1xf32>
      %66 = math.rsqrt %65 : vector<128x1xf32>
      %67 = vector.broadcast %66 : vector<128x1xf32> to vector<128x128xf32>
      %68 = arith.mulf %54, %67 : vector<128x128xf32>
      %c0_35 = arith.constant 0 : index
      %c0_36 = arith.constant 0 : index
      %69 = vector.load %arg11[%c0_35, %c0_36] : memref<1x128xf32, #tpu.memory_space<vmem>>, vector<1x128xf32>
      %70 = vector.broadcast %69 : vector<1x128xf32> to vector<128x128xf32>
      %71 = arith.mulf %68, %70 : vector<128x128xf32>
      %c0_37 = arith.constant 0 : index
      %c0_38 = arith.constant 0 : index
      %72 = vector.load %arg12[%c0_37, %c0_38] : memref<1x128xf32, #tpu.memory_space<vmem>>, vector<1x128xf32>
      %73 = vector.broadcast %72 : vector<1x128xf32> to vector<128x128xf32>
      %74 = arith.addf %71, %73 : vector<128x128xf32>
      %75 = arith.truncf %74 : vector<128x128xf32> to vector<128x128xbf16>
      %c0_39 = arith.constant 0 : index
      %c0_40 = arith.constant 0 : index
      %76 = vector.load %arg13[%c0_39, %c0_40] : memref<128x128xbf16, #tpu.memory_space<vmem>>, vector<128x128xbf16>
      %cst_41 = arith.constant dense<0.000000e+00> : vector<128x128xf32>
      %77 = tpu.matmul %75, %76, %cst_41 {dimension_numbers = #tpu.dot_dimension_numbers<[1], [0], [0], [1], [0, 0, 1, 1], [], []>} : vector<128x128xbf16>, vector<128x128xbf16>, vector<128x128xf32> -> vector<128x128xf32>
      %78 = vector.broadcast %24 : vector<128x1xf32> to vector<128x128xf32>
      %79 = arith.mulf %78, %77 : vector<128x128xf32>
      %80 = arith.truncf %79 : vector<128x128xf32> to vector<128x128xbf16>
      %c0_42 = arith.constant 0 : index
      %c0_43 = arith.constant 0 : index
      %81 = vector.load %arg16[%c0_42, %c0_43] : memref<128x128xbf16, #tpu.memory_space<vmem>>, vector<128x128xbf16>
      tpu.vector_store %arg16[%c0_42, %c0_43], %80 {strides = array<i32>} : memref<128x128xbf16, #tpu.memory_space<vmem>>, vector<128x128xbf16>,
      %cst_44 = arith.constant 0.000000e+00 : f32
      %82 = vector.broadcast %cst_44 : f32 to vector<128x128xf32>
      %c0_45 = arith.constant 0 : index
      %c0_46 = arith.constant 0 : index
      %83 = vector.load %arg17[%c0_45, %c0_46] : memref<128x128xf32, #tpu.memory_space<vmem>>, vector<128x128xf32>
      tpu.vector_store %arg17[%c0_45, %c0_46], %82 {strides = array<i32>} : memref<128x128xf32, #tpu.memory_space<vmem>>, vector<128x128xf32>,
    } else {
    }
    %c0 = arith.constant 0 : index
    %c0_4 = arith.constant 0 : index
    %10 = vector.load %arg4[%c0, %c0_4] : memref<256x128xbf16, #tpu.memory_space<vmem>>, vector<256x128xbf16>
    %c0_5 = arith.constant 0 : index
    %c0_6 = arith.constant 0 : index
    %11 = vector.load %arg16[%c0_5, %c0_6] : memref<128x128xbf16, #tpu.memory_space<vmem>>, vector<128x128xbf16>
    %cst = arith.constant dense<0.000000e+00> : vector<256x128xf32>
    %12 = tpu.matmul %10, %11, %cst {dimension_numbers = #tpu.dot_dimension_numbers<[1], [0], [0], [1], [0, 0, 1, 1], [], []>} : vector<256x128xbf16>, vector<128x128xbf16>, vector<256x128xf32> -> vector<256x128xf32>
    %c0_7 = arith.constant 0 : index
    %c0_8 = arith.constant 0 : index
    %13 = vector.load %arg17[%c0_7, %c0_8] : memref<128x128xf32, #tpu.memory_space<vmem>>, vector<128x128xf32>
    %c0_9 = arith.constant 0 : index
    %c0_10 = arith.constant 0 : index
    %14 = vector.load %arg3[%c0_9, %c0_10] : memref<128x256xbf16, #tpu.memory_space<vmem>>, vector<128x256xbf16>
    %15 = arith.truncf %12 : vector<256x128xf32> to vector<256x128xbf16>
    %cst_11 = arith.constant dense<0.000000e+00> : vector<128x128xf32>
    %16 = tpu.matmul %14, %15, %cst_11 {dimension_numbers = #tpu.dot_dimension_numbers<[1], [0], [0], [1], [0, 0, 1, 1], [], []>} : vector<128x256xbf16>, vector<256x128xbf16>, vector<128x128xf32> -> vector<128x128xf32>
    %17 = arith.addf %13, %16 : vector<128x128xf32>
    %c0_12 = arith.constant 0 : index
    %c0_13 = arith.constant 0 : index
    %18 = vector.load %arg17[%c0_12, %c0_13] : memref<128x128xf32, #tpu.memory_space<vmem>>, vector<128x128xf32>
    tpu.vector_store %arg17[%c0_12, %c0_13], %17 {strides = array<i32>} : memref<128x128xf32, #tpu.memory_space<vmem>>, vector<128x128xf32>,
    %c1_i32_14 = arith.constant 1 : i32
    %19 = arith.cmpi eq, %arg0, %c1_i32_14 : i32
    %c0_i32_15 = arith.constant 0 : i32
    %20 = arith.cmpi eq, %arg1, %c0_i32_15 : i32
    %21 = arith.andi %19, %20 : i1
    %22 = arith.extui %21 : i1 to i32
    %c0_i32_16 = arith.constant 0 : i32
    %23 = arith.cmpi ne, %22, %c0_i32_16 : i32
    scf.if %23 {
      %c0_17 = arith.constant 0 : index
      %c0_18 = arith.constant 0 : index
      %24 = vector.load %arg6[%c0_17, %c0_18] : memref<128x1xf32, #tpu.memory_space<vmem>>, vector<128x1xf32>
      %c0_19 = arith.constant 0 : index
      %c0_20 = arith.constant 0 : index
      %25 = vector.load %arg17[%c0_19, %c0_20] : memref<128x128xf32, #tpu.memory_space<vmem>>, vector<128x128xf32>
      %26 = vector.broadcast %24 : vector<128x1xf32> to vector<128x128xf32>
      %27 = arith.mulf %26, %25 : vector<128x128xf32>
      %c0_21 = arith.constant 0 : index
      %c0_22 = arith.constant 0 : index
      %28 = vector.load %arg16[%c0_21, %c0_22] : memref<128x128xbf16, #tpu.memory_space<vmem>>, vector<128x128xbf16>
      %29 = arith.extf %28 : vector<128x128xbf16> to vector<128x128xf32>
      %30 = vector.broadcast %24 : vector<128x1xf32> to vector<128x128xf32>
      %31 = arith.mulf %30, %29 : vector<128x128xf32>
      %32 = arith.addf %27, %31 : vector<128x128xf32>
      %c0_23 = arith.constant 0 : index
      %c0_24 = arith.constant 0 : index
      %33 = vector.load %arg14[%c0_23, %c0_24] : memref<1x128xf32, #tpu.memory_space<vmem>>, vector<1x128xf32>
      %34 = vector.broadcast %33 : vector<1x128xf32> to vector<128x128xf32>
      %35 = arith.addf %32, %34 : vector<128x128xf32>
      %c0_25 = arith.constant 0 : index
      %c0_26 = arith.constant 0 : index
      %36 = vector.load %arg5[%c0_25, %c0_26] : memref<8x128xf32, #tpu.memory_space<vmem>>, vector<8x128xf32>
      %cst_27 = arith.constant dense<0.000000e+00> : vector<8x128xf32>
      %37 = tpu.matmul %36, %35, %cst_27 {dimension_numbers = #tpu.dot_dimension_numbers<[1], [0], [0], [1], [0, 0, 1, 1], [], []>} : vector<8x128xf32>, vector<128x128xf32>, vector<8x128xf32> -> vector<8x128xf32>
      %c0_28 = arith.constant 0 : index
      %c0_29 = arith.constant 0 : index
      %38 = vector.load %arg15[%c0_28, %c0_29] : memref<8x128xf32, #tpu.memory_space<vmem>>, vector<8x128xf32>
      tpu.vector_store %arg15[%c0_28, %c0_29], %37 {strides = array<i32>} : memref<8x128xf32, #tpu.memory_space<vmem>>, vector<8x128xf32>,
    } else {
    }
    return
  }
  func.func @transform_0(%arg0: i32, %arg1: i32) -> (i32, i32) {
    %c0_i32 = arith.constant 0 : i32
    %c0_i32_0 = arith.constant 0 : i32
    %c0_i32_1 = arith.constant 0 : i32
    return %c0_i32, %c0_i32_0 : i32, i32
  }
  func.func @transform_1(%arg0: i32, %arg1: i32) -> (i32, i32) {
    %c0_i32 = arith.constant 0 : i32
    %c0_i32_0 = arith.constant 0 : i32
    return %c0_i32, %arg1 : i32, i32
  }
  func.func @transform_2(%arg0: i32, %arg1: i32) -> (i32, i32) {
    %c0_i32 = arith.constant 0 : i32
    %c0_i32_0 = arith.constant 0 : i32
    return %arg1, %c0_i32 : i32, i32
  }
  func.func @transform_3(%arg0: i32, %arg1: i32) -> (i32, i32) {
    %c0_i32 = arith.constant 0 : i32
    %c0_i32_0 = arith.constant 0 : i32
    %c0_i32_1 = arith.constant 0 : i32
    return %c0_i32, %c0_i32_0 : i32, i32
  }
  func.func @transform_4(%arg0: i32, %arg1: i32) -> (i32, i32) {
    %c0_i32 = arith.constant 0 : i32
    %c0_i32_0 = arith.constant 0 : i32
    %c0_i32_1 = arith.constant 0 : i32
    return %c0_i32, %c0_i32_0 : i32, i32
  }
  func.func @transform_5(%arg0: i32, %arg1: i32) -> (i32, i32) {
    %c0_i32 = arith.constant 0 : i32
    %c0_i32_0 = arith.constant 0 : i32
    %c0_i32_1 = arith.constant 0 : i32
    return %c0_i32, %c0_i32_0 : i32, i32
  }
  func.func @transform_6(%arg0: i32, %arg1: i32) -> (i32, i32) {
    %c0_i32 = arith.constant 0 : i32
    %c0_i32_0 = arith.constant 0 : i32
    %c0_i32_1 = arith.constant 0 : i32
    return %c0_i32, %c0_i32_0 : i32, i32
  }
  func.func @transform_7(%arg0: i32, %arg1: i32) -> (i32, i32) {
    %c0_i32 = arith.constant 0 : i32
    %c0_i32_0 = arith.constant 0 : i32
    %c0_i32_1 = arith.constant 0 : i32
    return %c0_i32, %c0_i32_0 : i32, i32
  }
  func.func @transform_8(%arg0: i32, %arg1: i32) -> (i32, i32) {
    %c0_i32 = arith.constant 0 : i32
    %c0_i32_0 = arith.constant 0 : i32
    %c0_i32_1 = arith.constant 0 : i32
    return %c0_i32, %c0_i32_0 : i32, i32
  }
  func.func @transform_9(%arg0: i32, %arg1: i32) -> (i32, i32) {
    %c0_i32 = arith.constant 0 : i32
    %c0_i32_0 = arith.constant 0 : i32
    %c0_i32_1 = arith.constant 0 : i32
    return %c0_i32, %c0_i32_0 : i32, i32
  }
  func.func @transform_10(%arg0: i32, %arg1: i32) -> (i32, i32) {
    %c0_i32 = arith.constant 0 : i32
    %c0_i32_0 = arith.constant 0 : i32
    %c0_i32_1 = arith.constant 0 : i32
    return %c0_i32, %c0_i32_0 : i32, i32
  }
  func.func @transform_11(%arg0: i32, %arg1: i32) -> (i32, i32) {
    %c0_i32 = arith.constant 0 : i32
    %c0_i32_0 = arith.constant 0 : i32
    %c0_i32_1 = arith.constant 0 : i32
    return %c0_i32, %c0_i32_0 : i32, i32
  }
  func.func @transform_12(%arg0: i32, %arg1: i32) -> (i32, i32) {
    %c0_i32 = arith.constant 0 : i32
    %c0_i32_0 = arith.constant 0 : i32
    %c0_i32_1 = arith.constant 0 : i32
    return %c0_i32, %c0_i32_0 : i32, i32
  }
  func.func @transform_13(%arg0: i32, %arg1: i32) -> (i32, i32) {
    %c0_i32 = arith.constant 0 : i32
    %c0_i32_0 = arith.constant 0 : i32
    %c0_i32_1 = arith.constant 0 : i32
    return %c0_i32, %c0_i32_0 : i32, i32
  }
}

</mosaic_0001>

<bundles_post_ra>
// kernel: tpu_custom_call.1
= control target key start
LH: loop header
LB: loop body
LE: loop exit
PB: predicated region body
PF: predicated region fallthrough
CT: control target
= control target key end

     0   :  { %s4849_s0 = inlined_call_operand.hbm [shape: bf16[128,128], index: 0, kind: input, shape index: {}]   ;;  %s4850_s1 = inlined_call_operand.vmem [shape: bf16[128,256], index: 1, kind: input, shape index: {}]   ;;  %s4851_s2 = inlined_call_operand.hbm [shape: bf16[256,128], index: 2, kind: input, shape index: {}]   ;;  %s4852_s3 = inlined_call_operand.vmem [shape: f32[8,128], index: 3, kind: input, shape index: {}]   ;;  %s4853_s4 = inlined_call_operand.vmem [shape: f32[128,1], index: 4, kind: input, shape index: {}]   ;;  %s4854_s5 = inlined_call_operand.hbm [shape: bf16[128,128], index: 5, kind: input, shape index: {}]   ;;  %s4855_s6 = inlined_call_operand.vmem [shape: f32[1,128], index: 6, kind: input, shape index: {}]   ;;  %s4856_s7 = inlined_call_operand.hbm [shape: bf16[128,128], index: 7, kind: input, shape index: {}]   ;;  %s4857_s8 = inlined_call_operand.vmem [shape: f32[1,128], index: 8, kind: input, shape index: {}]   ;;  %s4858_s9 = inlined_call_operand.vmem [shape: f32[1,128], index: 9, kind: input, shape index: {}]   ;;  %s4859_s10 = inlined_call_operand.vmem [shape: f32[1,128], index: 10, kind: input, shape index: {}]   ;;  %s4860_s11 = inlined_call_operand.hbm [shape: bf16[128,128], index: 11, kind: input, shape index: {}]   ;;  %s4861_s12 = inlined_call_operand.vmem [shape: f32[1,128], index: 12, kind: input, shape index: {}]   ;;  %s4862_s13 = inlined_call_operand.hbm [shape: f32[8,128], index: 13, kind: output, shape index: {}]  }
   0x1   :  { %4869 = sst [smem:[#allocation19_spill]] %s4851_s2 }
   0x2   :  { %4870 = sst [smem:[#allocation20_spill]] %s4852_s3 }
   0x3   :  { %4871 = sst [smem:[#allocation21_spill]] %s4861_s12 }
   0x4   :  { %4872 = sst [smem:[#allocation22_spill]] %s4862_s13 }
   0x5   :  { %18 = vsyncpa [#allocation5], 0 }
   0x6   :  { %19 = vsyncpa [#allocation8], 0 }
   0x7   :  { %20 = vsyncpa [#allocation11], 0 }
   0x8   :  { %21 = vsyncpa [#allocation6], 0  ;;  %s3852_s25 = smov 0   ;;  %s3854_s26 = smov 0  }
   0x9   :  { %s3856_s27 = smov 0  }
   0xa LB: > { %4873 = sst [smem:[#allocation18_spill]] %s3764_s27  ;;  %s4863_s28 = sadd.s32 4294967295, %s3764_s27   ;;  %s3764_s27 = sphi %s3856_s27, %s27_s27   ;;  %s3760_s26 = sphi %s3854_s26, %s4891_s26   ;;  %s3756_s25 = sphi %s3852_s25, %s4890_s25  }
   0xb   : > { %p2864_p0 = scmp.ge.s32.totalorder %s3764_s27, 1  ;;  %p348_p1 = scmp.lt.s32.totalorder %s3764_s27, 3 }
   0xc   : > { %p3872_p2 = scmp.eq.s32.totalorder %s4863_s28, 0  ;;  %s3766_s14 = smov [#allocation7]  }
   0xd   : > { %p3876_p3 = pnand %p2864_p0, %p348_p1  ;;  %s385_s15 = sshll.u32 %s3766_s14, 4  ;;  %s3880_s15 = int_to_ptr.vmem [resolvable:$true] %s385_s15 }
   0xe   : > { %s4874_s29 = scalar_select %p3872_p2, 1, 0 }
   0xf   : > { %s4875_s30 = scalar_select %p3876_p3, 1, 0 }
  0x10   : > { %p3350_p4 = pneg %p3876_p3  ;;  %s3767_s16 = smov [#allocation10]  }
  0x11   : > { %s420_s17 = sshll.u32 %s3767_s16, 4  ;;  %s4877_s2 = sld [smem:[#allocation19_spill]]  ;;  %s3884_s17 = int_to_ptr.vmem [resolvable:$true] %s420_s17 }
  0x12   : > { %p3888_p5 = pnand %p3872_p2, %p3350_p4 }
  0x14   : > { %p3901_p7 = pneg %p3888_p5 }
  0x17   : > { %s3560_s22 = scalar_lea.hbm %s4877_s2, 2048 }
  0x18   : > { %p3561_p6 = scmp.ne.s32.totalorder %s4877_s2, %s3560_s22  ;;  %p3567_p10 = scmp.lt.u32.totalorder %s3560_s22, %s4877_s2 }
  0x1a   : > { %p3563_p8 = pnand %p3901_p7, %p3561_p6 }
  0x1c   : > { %p3564_p9 = pneg %p3563_p8 }
  0x1e   : > { %p3569_p11 = pnand %p3567_p10, %p3564_p9 }
  0x20   : > { %3572 = shalt.err (!%p3569_p11)
}
  0x21   : > { %s3573_s20 = scalar_lea.vmem %s3880_s15, 2048  ;;  %p3581_p1 = scmp.lt.s32.totalorder %s3880_s15, %s3880_s15 }
  0x22   : > { %p3574_p12 = scmp.ne.s32.totalorder %s3880_s15, %s3573_s20  ;;  %p3582_p4 = scmp.lt.s32.totalorder %s3573_s20, %s3573_s20 }
  0x24   : > { %p3576_p13 = pnand %p3574_p12, %p3901_p7  ;;  %p3583_p6 = por %p3582_p4, %p3581_p1 }
  0x26   : > { %p3577_p0 = pneg %p3576_p13 }
  0x28   : > { %p3584_p8 = pnand %p3583_p6, %p3577_p0 }
  0x2a   : > { %3587 = shalt.err (!%p3584_p8)
}
  0x2b   : > { %s3768_s21 = smov 64   ;;  %s3769_s28 = smov 4  }
  0x2c   : > { %3356 = dma.hbm_to_vmem [thread:$0]  (!%p3888_p5), %s4877_s2, 2048, %s3880_s15, [#allocation8], %s3768_s21, %s3768_s21, %s3769_s28  }
  0x2d   : > { %s3588_s20 = scalar_lea.hbm %s4856_s7, 1024 }
  0x2e   : > { %p3589_p9 = scmp.ne.s32.totalorder %s4856_s7, %s3588_s20  ;;  %p3595_p12 = scmp.lt.u32.totalorder %s3588_s20, %s4856_s7 }
  0x30   : > { %p3591_p10 = pnand %p3589_p9, %p3901_p7 }
  0x32   : > { %p3592_p11 = pneg %p3591_p10 }
  0x34   : > { %p3597_p13 = pnand %p3595_p12, %p3592_p11 }
  0x36   : > { %3600 = shalt.err (!%p3597_p13)
}
  0x37   : > { %s3601_s15 = scalar_lea.vmem %s3884_s17, 1024  ;;  %p3609_p6 = scmp.lt.s32.totalorder %s3884_s17, %s3884_s17 }
  0x38   : > { %p3602_p0 = scmp.ne.s32.totalorder %s3884_s17, %s3601_s15  ;;  %p3610_p8 = scmp.lt.s32.totalorder %s3601_s15, %s3601_s15 }
  0x3a   : > { %p3604_p1 = pnand %p3602_p0, %p3901_p7  ;;  %p3611_p9 = por %p3610_p8, %p3609_p6 }
  0x3c   : > { %p3605_p4 = pneg %p3604_p1 }
  0x3e   : > { %p3612_p10 = pnand %p3611_p9, %p3605_p4 }
  0x40   : > { %3615 = shalt.err (!%p3612_p10)
}
  0x41   : > { %3362 = dma.hbm_to_vmem [thread:$0]  (!%p3888_p5), %s4856_s7, 1024, %s3884_s17, [#allocation11], %s3768_s21, %s3768_s21, %s3769_s28  }
  0x42   : > { %s4879_s27 = sadd.s32 1, %s3760_s26  ;;  %s3770_s19 = smov [#allocation4]  }
  0x43   : > { %p41_p11 = scmp.ge.s32.totalorder %s4879_s27, 2  ;;  %s360_s22 = sshll.u32 %s3770_s19, 4  ;;  %s361_s22 = int_to_ptr.vmem [resolvable:$true] %s360_s22 }
  0x44   : > { %s4880_s23 = smov %s4879_s27  ;;  %s3771_s24 = smov [#allocation9]  }
  0x45   : > { %s4893_s23 = smov (%p41_p11, %s4880_s23), 0  ;;  %s404_s16 = sshll.u32 %s3771_s24, 4  ;;  %s405_s16 = int_to_ptr.vmem [resolvable:$true] %s404_s16 }
  0x46   : > { %s3616_s2 = scalar_lea.hbm %s4849_s0, 1024 }
  0x47   : > { %p3617_p12 = scmp.ne.s32.totalorder %s4849_s0, %s3616_s2  ;;  %p3623_p1 = scmp.lt.u32.totalorder %s3616_s2, %s4849_s0 }
  0x49   : > { %p3619_p13 = pnand %p3617_p12, %p3901_p7 }
  0x4b   : > { %p3620_p0 = pneg %p3619_p13 }
  0x4d   : > { %p3625_p4 = pnand %p3623_p1, %p3620_p0 }
  0x4f   : > { %3628 = shalt.err (!%p3625_p4)
}
  0x50   : > { %s3629_s27 = scalar_lea.vmem %s361_s22, 1024  ;;  %p3637_p10 = scmp.lt.s32.totalorder %s361_s22, %s361_s22 }
  0x51   : > { %p3630_p6 = scmp.ne.s32.totalorder %s361_s22, %s3629_s27  ;;  %p3638_p11 = scmp.lt.s32.totalorder %s3629_s27, %s3629_s27 }
  0x53   : > { %p3632_p8 = pnand %p3630_p6, %p3901_p7  ;;  %p3639_p2 = por %p3638_p11, %p3637_p10 }
  0x55   : > { %p3633_p9 = pneg %p3632_p8 }
  0x57   : > { %p3640_p3 = pnand %p3639_p2, %p3633_p9 }
  0x59   : > { %3643 = shalt.err (!%p3640_p3)
}
  0x5a   : > { %3353 = dma.hbm_to_vmem [thread:$0]  (!%p3888_p5), %s4849_s0, 1024, %s361_s22, [#allocation5], %s3768_s21, %s3768_s21, %s3769_s28  }
  0x5b   : > { %s3644_s20 = scalar_lea.hbm %s4854_s5, 1024 }
  0x5c   : > { %p3645_p2 = scmp.ne.s32.totalorder %s4854_s5, %s3644_s20  ;;  %p3651_p13 = scmp.lt.u32.totalorder %s3644_s20, %s4854_s5 }
  0x5e   : > { %p3647_p3 = pnand %p3645_p2, %p3901_p7 }
  0x60   : > { %p3648_p12 = pneg %p3647_p3 }
  0x62   : > { %p3653_p0 = pnand %p3651_p13, %p3648_p12 }
  0x64   : > { %3656 = shalt.err (!%p3653_p0)
}
  0x65   : > { %s3657_s27 = scalar_lea.vmem %s405_s16, 1024  ;;  %p3665_p8 = scmp.lt.s32.totalorder %s405_s16, %s405_s16 }
  0x66   : > { %p3658_p1 = scmp.ne.s32.totalorder %s405_s16, %s3657_s27  ;;  %p3666_p9 = scmp.lt.s32.totalorder %s3657_s27, %s3657_s27 }
  0x68   : > { %p3660_p4 = pnand %p3658_p1, %p3901_p7  ;;  %p3667_p10 = por %p3666_p9, %p3665_p8 }
  0x6a   : > { %p3661_p6 = pneg %p3660_p4 }
  0x6c   : > { %p3668_p11 = pnand %p3667_p10, %p3661_p6 }
  0x6e   : > { %3671 = shalt.err (!%p3668_p11)
}
  0x6f   : > { %3359 = dma.hbm_to_vmem [thread:$0]  (!%p3888_p5), %s4854_s5, 1024, %s405_s16, [#allocation8], %s3768_s21, %s3768_s21, %s3769_s28  }
  0x70   : > { %s3772_s2 = smov [#allocation12]   ;;  %s3672_s15 = scalar_lea.hbm %s4860_s11, 1024 }
  0x71   : > { %s442_s19 = sshll.u32 %s3772_s2, 4  ;;  %p3673_p2 = scmp.ne.s32.totalorder %s4860_s11, %s3672_s15  ;;  %s443_s19 = int_to_ptr.vmem [resolvable:$true] %s442_s19 }
  0x72   : > { %p3679_p13 = scmp.lt.u32.totalorder %s3672_s15, %s4860_s11 }
  0x73   : > { %p3675_p3 = pnand %p3673_p2, %p3901_p7 }
  0x75   : > { %p3676_p12 = pneg %p3675_p3 }
  0x77   : > { %p3681_p0 = pnand %p3679_p13, %p3676_p12 }
  0x79   : > { %3684 = shalt.err (!%p3681_p0)
}
  0x7a   : > { %s3685_s16 = scalar_lea.vmem %s443_s19, 1024  ;;  %p3693_p8 = scmp.lt.s32.totalorder %s443_s19, %s443_s19 }
  0x7b   : > { %p3686_p1 = scmp.ne.s32.totalorder %s443_s19, %s3685_s16  ;;  %p3694_p9 = scmp.lt.s32.totalorder %s3685_s16, %s3685_s16 }
  0x7d   : > { %p3688_p4 = pnand %p3686_p1, %p3901_p7  ;;  %p3695_p10 = por %p3694_p9, %p3693_p8 }
  0x7f   : > { %p3689_p6 = pneg %p3688_p4 }
  0x81   : > { %p3696_p11 = pnand %p3695_p10, %p3689_p6 }
  0x83   : > { %3699 = shalt.err (!%p3696_p11)
}
  0x84   : > { %3365 = dma.hbm_to_vmem [thread:$0]  (!%p3888_p5), %s4860_s11, 1024, %s443_s19, [#allocation11], %s3768_s21, %s3768_s21, %s3769_s28  }
  0x85   : > { %p4881_p2 = scmp.ne.s32.totalorder %s4875_s30, 0 }
  0x86   : > { %p4882_p7 = scmp.ne.s32.totalorder (!%p4881_p2), %s4874_s29, 0 }
  0x87   : > { %461 = sbr.rel (%p4881_p2) target bundleno = 2343 (0x927), region = 72 }
  0x8e   : > { %3739 = dma.done.wait (%p4882_p7), [#allocation5], 1024  }
  0x8f   : > { %3741 = vsyncadd (%p4882_p7), [#allocation5], 4294966272 }
  0x90   : > { %3743 = dma.done.wait (%p4882_p7), [#allocation8], 3072  }
  0x91   : > { %3745 = vsyncadd (%p4882_p7), [#allocation8], 4294964224 }
  0x92   : > { %3747 = dma.done.wait (%p4882_p7), [#allocation11], 2048  }
  0x93   : > { %3749 = vsyncadd (%p4882_p7), [#allocation11], 4294965248  ;;  %p524_p5 = scmp.eq.s32.totalorder %s3756_s25, 0 }
  0x94   : > { %v3420_v0 = vld [vmem:[#allocation9] sm:$0xff] (%p524_p5)   ;;  %v3421_v1 = vld [vmem:[#allocation9 + $0x8] sm:$0xff] (%p524_p5)   ;;  %v3422_v2 = vld [vmem:[#allocation9 + $0x10] sm:$0xff] (%p524_p5)   ;;  %v3773_v26 = vmov (%p524_p5), 0  }
  0x95   : > { %529 = sbr.rel (!%p524_p5) target bundleno = 645 (0x285), region = 96  ;;  %3107 = vmatprep.subr.bf16.mxu0 (%p524_p5), %v3420_v0  ;;  %v3423_v3 = vld [vmem:[#allocation9 + $0x18] sm:$0xff] (%p524_p5)   ;;  %v3428_v4 = vld [vmem:[#allocation4] sm:$0xff] (%p524_p5)   ;;  %v3425_v6 = vld [vmem:[#allocation9 + $0x28] sm:$0xff] (%p524_p5)   ;;  %3419 = vset.pattern.permute.xlu1 (%p524_p5), %v3773_v26 }
  0x96   : > { %3108 = vmatpush3.bf16.msra.mxu0 (%p524_p5), %v3420_v0  ;;  %3123 = vmatprep.mubr.bf16.mxu0 (%p524_p5), %v3428_v4  ;;  %v3424_v5 = vld [vmem:[#allocation9 + $0x20] sm:$0xff] (%p524_p5)   ;;  %v3437_v8 = vld [vmem:[#allocation10 + $0x8] sm:$0xff] (%p524_p5)   ;;  %v3426_v9 = vld [vmem:[#allocation9 + $0x30] sm:$0xff] (%p524_p5)  }
  0x97   : > { %3109 = vmatprep.subr.bf16.mxu0 (%p524_p5), %v3421_v1  ;;  %v3436_v7 = vld [vmem:[#allocation10] sm:$0xff] (%p524_p5)   ;;  %v3438_v10 = vld [vmem:[#allocation10 + $0x10] sm:$0xff] (%p524_p5)   ;;  %v3427_v11 = vld [vmem:[#allocation9 + $0x38] sm:$0xff] (%p524_p5)   ;;  %3418 = vset.pattern.permute.xlu0 (%p524_p5), %v3773_v26 }
  0x98   : > { %3139 = vmatprep.subr.bf16.mxu1 (%p524_p5), %v3436_v7  ;;  %v3439_v12 = vld [vmem:[#allocation10 + $0x18] sm:$0xff] (%p524_p5)   ;;  %v3440_v13 = vld [vmem:[#allocation10 + $0x20] sm:$0xff] (%p524_p5)   ;;  %v3429_v14 = vld [vmem:[#allocation4 + $0x8] sm:$0xff] (%p524_p5)  }
  0x99   : > { %3140 = vmatpush3.bf16.msra.mxu1 (%p524_p5), %v3436_v7  ;;  %v3430_v15 = vld [vmem:[#allocation4 + $0x10] sm:$0xff] (%p524_p5)   ;;  %v3441_v16 = vld [vmem:[#allocation10 + $0x28] sm:$0xff] (%p524_p5)   ;;  %v3431_v17 = vld [vmem:[#allocation4 + $0x18] sm:$0xff] (%p524_p5)  }
  0x9a   : > { %3110 = vmatpush3.bf16.msra.mxu0 (%p524_p5), %v3421_v1  ;;  %3141 = vmatprep.subr.bf16.mxu1 (%p524_p5), %v3437_v8  ;;  %v3432_v18 = vld [vmem:[#allocation4 + $0x20] sm:$0xff] (%p524_p5)   ;;  %v3433_v19 = vld [vmem:[#allocation4 + $0x28] sm:$0xff] (%p524_p5)   ;;  %v3434_v20 = vld [vmem:[#allocation4 + $0x30] sm:$0xff] (%p524_p5)  }
  0x9b   : > { %3111 = vmatprep.subr.bf16.mxu0 (%p524_p5), %v3422_v2  ;;  %v3435_v21 = vld [vmem:[#allocation4 + $0x38] sm:$0xff] (%p524_p5)   ;;  %v3442_v22 = vld [vmem:[#allocation10 + $0x30] sm:$0xff] (%p524_p5)   ;;  %v530_v25 = vld [vmem:[%s4853_s4] sm:$0xff] (%p524_p5) }
  0x9c   : > { %v3443_v23 = vld [vmem:[#allocation10 + $0x38] sm:$0xff]   ;;  %v532_v24 = vld [vmem:[%s4853_s4 + $0x10] sm:$0xff]  ;;  %949 = vperm.xlu0 %3418, %v530_v25   ;;  %v531_v28 = vld [vmem:[%s4853_s4 + $0x8] sm:$0xff] }
  0x9d   : > { %3142 = vmatpush3.bf16.msra.mxu1 %v3437_v8  ;;  %959 = vperm.xlu1 %3419, %v532_v24   ;;  %v533_v27 = vld [vmem:[%s4853_s4 + $0x18] sm:$0xff]  ;;  %v535_v29 = vld [vmem:[%s4853_s4 + $0x28] sm:$0xff]  ;;  %v534_v30 = vld [vmem:[%s4853_s4 + $0x20] sm:$0xff] }
  0x9e   : > { %3112 = vmatpush3.bf16.msra.mxu0 %v3422_v2  ;;  %3143 = vmatprep.subr.bf16.mxu1 %v3438_v10  ;;  %v537_v31 = vld [vmem:[%s4853_s4 + $0x38] sm:$0xff]  ;;  %v536_v32 = vld [vmem:[%s4853_s4 + $0x30] sm:$0xff]  ;;  %v539_v33 = vld [vmem:[%s4853_s4 + $0x48] sm:$0xff] }
  0x9f   : > { %3113 = vmatprep.subr.bf16.mxu0 %v3423_v3  ;;  %v538_v34 = vld [vmem:[%s4853_s4 + $0x40] sm:$0xff]  ;;  %v541_v35 = vld [vmem:[%s4853_s4 + $0x58] sm:$0xff]  ;;  %v540_v36 = vld [vmem:[%s4853_s4 + $0x50] sm:$0xff] }
  0xa0   : > { %954 = vperm.xlu0 %3418, %v531_v28   ;;  %v543_v37 = vld [vmem:[%s4853_s4 + $0x68] sm:$0xff]  ;;  %v542_v38 = vld [vmem:[%s4853_s4 + $0x60] sm:$0xff]  ;;  %v545_v39 = vld [vmem:[%s4853_s4 + $0x78] sm:$0xff] }
  0xa1   : > { %3144 = vmatpush3.bf16.msra.mxu1 %v3438_v10  ;;  %964 = vperm.xlu1 %3419, %v533_v27   ;;  %v544_v40 = vld [vmem:[%s4853_s4 + $0x70] sm:$0xff]  ;;  %v2878_v42 = vld [vmem:[%s4855_s6] ss:$0 sm:$0xff] }
  0xa2   : > { %3114 = vmatpush3.bf16.msra.mxu0 %v3423_v3  ;;  %3145 = vmatprep.subr.bf16.mxu1 %v3439_v12 }
  0xa3   : > { %3115 = vmatprep.subr.bf16.mxu0 %v3424_v5 }
  0xa4   : > { %969 = vperm.xlu0 %3418, %v534_v30  }
  0xa5   : > { %3146 = vmatpush3.bf16.msra.mxu1 %v3439_v12  ;;  %974 = vperm.xlu1 %3419, %v535_v29  }
  0xa6   : > { %3116 = vmatpush3.bf16.msra.mxu0 %v3424_v5  ;;  %3147 = vmatprep.subr.bf16.mxu1 %v3440_v13 }
  0xa7   : > { %3117 = vmatprep.subr.bf16.mxu0 %v3425_v6 }
  0xa8   : > { %979 = vperm.xlu0 %3418, %v536_v32  }
  0xa9   : > { %3148 = vmatpush3.bf16.msra.mxu1 %v3440_v13  ;;  %984 = vperm.xlu1 %3419, %v537_v31  }
  0xaa   : > { %3118 = vmatpush3.bf16.msra.mxu0 %v3425_v6  ;;  %3149 = vmatprep.subr.bf16.mxu1 %v3441_v16 }
  0xab   : > { %3119 = vmatprep.subr.bf16.mxu0 %v3426_v9 }
  0xac   : > { %989 = vperm.xlu0 %3418, %v538_v34  }
  0xad   : > { %3150 = vmatpush3.bf16.msra.mxu1 %v3441_v16  ;;  %994 = vperm.xlu1 %3419, %v539_v33  }
  0xae   : > { %3120 = vmatpush3.bf16.msra.mxu0 %v3426_v9  ;;  %3151 = vmatprep.subr.bf16.mxu1 %v3442_v22 }
  0xaf   : > { %3121 = vmatprep.subr.bf16.mxu0 %v3427_v11 }
  0xb0   : > { %999 = vperm.xlu0 %3418, %v540_v36  }
  0xb1   : > { %3152 = vmatpush3.bf16.msra.mxu1 %v3442_v22  ;;  %1004 = vperm.xlu1 %3419, %v541_v35  }
  0xb2   : > { %3122 = vmatpush3.bf16.msra.mxu0 %v3427_v11  ;;  %3153 = vmatprep.subr.bf16.mxu1 %v3443_v23 }
  0xb4   : > { %1009 = vperm.xlu0 %3418, %v542_v38  }
  0xb5   : > { %3124 = vmatmul.mubr.bf16.vlgmr.msra.gmra.mrb[0].mxu0 %v3429_v14  ;;  %3154 = vmatpush3.bf16.msra.mxu1 %v3443_v23 }
  0xb6   : > { %3127 = vmatprep.mubr.bf16.mxu0 %v3430_v15  ;;  %1014 = vperm.xlu1 %3419, %v543_v37  }
  0xb8   : > { %1019 = vperm.xlu0 %3418, %v544_v40  }
  0xba   : > { %1024 = vperm.xlu1 %3419, %v545_v39  }
  0xbd   : > { %3128 = vmatmul.mubr.bf16.gmra.mrb[4].mxu0 %v3431_v17 }
  0xbe   : > { %3131 = vmatprep.mubr.bf16.mxu0 %v3432_v18  ;;  %v3774_v18 = vmov 0.0  }
  0xbf   : > { %1059 = vst [vmem:[#allocation3] sm:$0xff] %v3774_v18  ;;  %1060 = vst [vmem:[#allocation3 + $0x8] sm:$0xff] %v3774_v18 }
  0xc0   : > { %1061 = vst [vmem:[#allocation3 + $0x10] sm:$0xff] %v3774_v18  ;;  %1062 = vst [vmem:[#allocation3 + $0x18] sm:$0xff] %v3774_v18 }
  0xc1   : > { %1063 = vst [vmem:[#allocation3 + $0x20] sm:$0xff] %v3774_v18  ;;  %1064 = vst [vmem:[#allocation3 + $0x28] sm:$0xff] %v3774_v18 }
  0xc2   : > { %1065 = vst [vmem:[#allocation3 + $0x30] sm:$0xff] %v3774_v18  ;;  %1066 = vst [vmem:[#allocation3 + $0x38] sm:$0xff] %v3774_v18 }
  0xc3   : > { %1067 = vst [vmem:[#allocation3 + $0x40] sm:$0xff] %v3774_v18  ;;  %1068 = vst [vmem:[#allocation3 + $0x48] sm:$0xff] %v3774_v18 }
  0xc4   : > { %1069 = vst [vmem:[#allocation3 + $0x50] sm:$0xff] %v3774_v18  ;;  %1070 = vst [vmem:[#allocation3 + $0x58] sm:$0xff] %v3774_v18 }
  0xc5   : > { %3132 = vmatmul.mubr.bf16.gmra.mrb[8].mxu0 %v3433_v19  ;;  %1071 = vst [vmem:[#allocation3 + $0x60] sm:$0xff] %v3774_v18  ;;  %1072 = vst [vmem:[#allocation3 + $0x68] sm:$0xff] %v3774_v18 }
  0xc6   : > { %3135 = vmatprep.mubr.bf16.mxu0 %v3434_v20  ;;  %1073 = vst [vmem:[#allocation3 + $0x70] sm:$0xff] %v3774_v18  ;;  %1074 = vst [vmem:[#allocation3 + $0x78] sm:$0xff] %v3774_v18 }
  0xcd   : > { %3136 = vmatmul.mubr.bf16.gmra.mrb[12].mxu0 %v3435_v21 }
 0x11b   : > { %v950_v20 = vpop.permute.xlu0 %949 }
 0x11c   : > { %v960_v19 = vpop.permute.xlu1 %959 }
 0x11f   : > { %v955_v22 = vpop.permute.xlu0 %954 }
 0x120   : > { %v965_v21 = vpop.permute.xlu1 %964 }
 0x123   : > { %v970_v24 = vpop.permute.xlu0 %969 }
 0x124   : > { %v975_v23 = vpop.permute.xlu1 %974 }
 0x127   : > { %v980_v28 = vpop.permute.xlu0 %979 }
 0x128   : > { %v985_v26 = vpop.permute.xlu1 %984 }
 0x12b   : > { %v990_v38 = vpop.permute.xlu0 %989 }
 0x12c   : > { %v995_v37 = vpop.permute.xlu1 %994 }
 0x188   : > { %v3125_v41 = vpop.f32.mrb[0].mxu0 }
 0x189   : > { %v715_v43 = vpop.f32.mrb[1].mxu0  ;;  %v724_v45 = vadd.f32 %v3125_v41, %v2878_v42 }
 0x18a   : > { %v3126_v44 = vpop.f32.mrb[2].mxu0  ;;  %v716_v48 = vadd.f32 %v2878_v42, %v715_v43 }
 0x18b   : > { %v727_v46 = vadd.f32 %v3126_v44, %v2878_v42  ;;  %v718_v47 = vpop.f32.mrb[3].mxu0 }
 0x18c   : > { %v719_v49 = vadd.f32 %v2878_v42, %v718_v47  ;;  %v1005_v47 = vpop.permute.xlu1 %1004 }
 0x18d   : > { %v779_v50 = vpack.c.bf16 %v727_v46, %v724_v45 }
 0x18e   : > { %v778_v51 = vpack.c.bf16 %v719_v49, %v716_v48  ;;  %v1000_v49 = vpop.permute.xlu0 %999 }
 0x190   : > { %v3129_v52 = vpop.f32.mrb[4].mxu0  ;;  %3155 = vmatprep.mubr.bf16.mxu1 %v778_v51 }
 0x191   : > { %v731_v53 = vpop.f32.mrb[5].mxu0  ;;  %3156 = vmatmul.mubr.bf16.vlgmr.msra.gmra.mrb[0].mxu1 %v779_v50  ;;  %v740_v55 = vadd.f32 %v3129_v52, %v2878_v42 }
 0x192   : > { %v3130_v54 = vpop.f32.mrb[6].mxu0  ;;  %v732_v58 = vadd.f32 %v2878_v42, %v731_v53 }
 0x193   : > { %v743_v56 = vadd.f32 %v3130_v54, %v2878_v42  ;;  %v734_v57 = vpop.f32.mrb[7].mxu0  ;;  %v1015_v54 = vpop.permute.xlu1 %1014 }
 0x194   : > { %v735_v59 = vadd.f32 %v2878_v42, %v734_v57 }
 0x195   : > { %v781_v60 = vpack.c.bf16 %v743_v56, %v740_v55 }
 0x196   : > { %v780_v61 = vpack.c.bf16 %v735_v59, %v732_v58  ;;  %v1010_v58 = vpop.permute.xlu0 %1009 }
 0x198   : > { %v3133_v62 = vpop.f32.mrb[8].mxu0  ;;  %3159 = vmatprep.mubr.bf16.mxu1 %v780_v61 }
 0x199   : > { %v747_v63 = vpop.f32.mrb[9].mxu0  ;;  %3160 = vmatmul.mubr.bf16.gmra.mrb[4].mxu1 %v781_v60  ;;  %v756_v1 = vadd.f32 %v3133_v62, %v2878_v42 }
 0x19a   : > { %v3134_v0 = vpop.f32.mrb[10].mxu0  ;;  %v748_v4 = vadd.f32 %v2878_v42, %v747_v63 }
 0x19b   : > { %v759_v2 = vadd.f32 %v3134_v0, %v2878_v42  ;;  %v750_v3 = vpop.f32.mrb[11].mxu0  ;;  %v1025_v0 = vpop.permute.xlu1 %1024 }
 0x19c   : > { %v751_v5 = vadd.f32 %v2878_v42, %v750_v3 }
 0x19d   : > { %v783_v6 = vpack.c.bf16 %v759_v2, %v756_v1  ;;  %v1020_v2 = vpop.permute.xlu0 %1019 }
 0x19e   : > { %v782_v7 = vpack.c.bf16 %v751_v5, %v748_v4 }
 0x1a0   : > { %v3137_v8 = vpop.f32.mrb[12].mxu0  ;;  %3163 = vmatprep.mubr.bf16.mxu1 %v782_v7 }
 0x1a1   : > { %v763_v9 = vpop.f32.mrb[13].mxu0  ;;  %3164 = vmatmul.mubr.bf16.gmra.mrb[8].mxu1 %v783_v6  ;;  %v772_v11 = vadd.f32 %v3137_v8, %v2878_v42 }
 0x1a2   : > { %v3138_v10 = vpop.f32.mrb[14].mxu0  ;;  %v764_v14 = vadd.f32 %v2878_v42, %v763_v9 }
 0x1a3   : > { %v775_v12 = vadd.f32 %v3138_v10, %v2878_v42  ;;  %v766_v13 = vpop.f32.mrb[15].mxu0 }
 0x1a4   : > { %v767_v15 = vadd.f32 %v2878_v42, %v766_v13 }
 0x1a5   : > { %v785_v16 = vpack.c.bf16 %v775_v12, %v772_v11 }
 0x1a6   : > { %v784_v17 = vpack.c.bf16 %v767_v15, %v764_v14 }
 0x1a8   : > { %3167 = vmatprep.mubr.bf16.mxu1 %v784_v17 }
 0x1a9   : > { %3168 = vmatmul.mubr.bf16.gmra.mrb[12].mxu1 %v785_v16 }
 0x264   : > { %v3157_v25 = vpop.f32.mrb[0].mxu1 }
 0x265   : > { %v884_v27 = vpop.f32.mrb[1].mxu1  ;;  %v1029_v30 = vmul.f32 %v3157_v25, %v960_v19 }
 0x266   : > { %v3158_v29 = vpop.f32.mrb[2].mxu1  ;;  %v1027_v33 = vmul.f32 %v950_v20, %v884_v27 }
 0x267   : > { %v1030_v31 = vmul.f32 %v3158_v29, %v965_v21  ;;  %v887_v32 = vpop.f32.mrb[3].mxu1 }
 0x268   : > { %v1028_v34 = vmul.f32 %v955_v22, %v887_v32 }
 0x269   : > { %v1044_v35 = vpack.c.bf16 %v1030_v31, %v1029_v30 }
 0x26a   : > { %v1043_v36 = vpack.c.bf16 %v1028_v34, %v1027_v33 }
 0x26b   : > { %1052 = vst [vmem:[#allocation2 + $0x8] sm:$0xff] %v1044_v35 }
 0x26c   : > { %1051 = vst [vmem:[#allocation2] sm:$0xff] %v1043_v36  ;;  %v3161_v39 = vpop.f32.mrb[4].mxu1 }
 0x26d   : > { %v900_v40 = vpop.f32.mrb[5].mxu1  ;;  %v1033_v42 = vmul.f32 %v3161_v39, %v980_v28 }
 0x26e   : > { %v3162_v41 = vpop.f32.mrb[6].mxu1  ;;  %v1031_v45 = vmul.f32 %v970_v24, %v900_v40 }
 0x26f   : > { %v1034_v43 = vmul.f32 %v3162_v41, %v985_v26  ;;  %v903_v44 = vpop.f32.mrb[7].mxu1 }
 0x270   : > { %v1032_v46 = vmul.f32 %v975_v23, %v903_v44 }
 0x271   : > { %v1046_v48 = vpack.c.bf16 %v1034_v43, %v1033_v42 }
 0x272   : > { %v1045_v50 = vpack.c.bf16 %v1032_v46, %v1031_v45 }
 0x273   : > { %1054 = vst [vmem:[#allocation2 + $0x18] sm:$0xff] %v1046_v48 }
 0x274   : > { %1053 = vst [vmem:[#allocation2 + $0x10] sm:$0xff] %v1045_v50  ;;  %v3165_v51 = vpop.f32.mrb[8].mxu1 }
 0x275   : > { %v916_v52 = vpop.f32.mrb[9].mxu1  ;;  %v1037_v55 = vmul.f32 %v3165_v51, %v1000_v49 }
 0x276   : > { %v3166_v53 = vpop.f32.mrb[10].mxu1  ;;  %v1035_v59 = vmul.f32 %v990_v38, %v916_v52 }
 0x277   : > { %v1038_v56 = vmul.f32 %v3166_v53, %v1005_v47  ;;  %v919_v57 = vpop.f32.mrb[11].mxu1 }
 0x278   : > { %v1036_v60 = vmul.f32 %v995_v37, %v919_v57 }
 0x279   : > { %v1048_v61 = vpack.c.bf16 %v1038_v56, %v1037_v55 }
 0x27a   : > { %v1047_v62 = vpack.c.bf16 %v1036_v60, %v1035_v59 }
 0x27b   : > { %1056 = vst [vmem:[#allocation2 + $0x28] sm:$0xff] %v1048_v61 }
 0x27c   : > { %1055 = vst [vmem:[#allocation2 + $0x20] sm:$0xff] %v1047_v62  ;;  %v3169_v63 = vpop.f32.mrb[12].mxu1 }
 0x27d   : > { %v932_v1 = vpop.f32.mrb[13].mxu1  ;;  %v1041_v4 = vmul.f32 %v3169_v63, %v1020_v2 }
 0x27e   : > { %v3170_v3 = vpop.f32.mrb[14].mxu1  ;;  %v1039_v7 = vmul.f32 %v1010_v58, %v932_v1 }
 0x27f   : > { %v1042_v5 = vmul.f32 %v3170_v3, %v1025_v0  ;;  %v935_v6 = vpop.f32.mrb[15].mxu1 }
 0x280   : > { %v1040_v8 = vmul.f32 %v1015_v54, %v935_v6 }
 0x281   : > { %v1050_v9 = vpack.c.bf16 %v1042_v5, %v1041_v4 }
 0x282   : > { %v1049_v10 = vpack.c.bf16 %v1040_v8, %v1039_v7 }
 0x283   : > { %1058 = vst [vmem:[#allocation2 + $0x38] sm:$0xff] %v1050_v9 }
 0x284   : > { %1057 = vst [vmem:[#allocation2 + $0x30] sm:$0xff] %v1049_v10 }
 0x285 PF: > { %p1075_p3 = scmp.eq.s32.totalorder %s3756_s25, 1 }
 0x286   : > { %v1088_v11 = vld [vmem:[%s4853_s4 + $0x40] sm:$0xff] (%p1075_p3)  ;;  %v3775_v13 = vmov (%p1075_p3), 0   ;;  %v1089_v14 = vld [vmem:[%s4853_s4 + $0x48] sm:$0xff] (%p1075_p3)  ;;  %v1083_v17 = vld [vmem:[%s4853_s4 + $0x18] sm:$0xff] (%p1075_p3)  ;;  %v3776_v19 = vmov (%p1075_p3), 0.0  }
 0x287   : > { %1079 = sbr.rel (!%p1075_p3) target bundleno = 1382 (0x566), region = 100  ;;  %v1080_v12 = vld [vmem:[%s4853_s4] sm:$0xff] (%p1075_p3)  ;;  %3445 = vset.pattern.permute.xlu1 (%p1075_p3), %v3775_v13  ;;  %3444 = vset.pattern.permute.xlu0 (%p1075_p3), %v3775_v13  ;;  %v1081_v15 = vld [vmem:[%s4853_s4 + $0x8] sm:$0xff] (%p1075_p3)  ;;  %v1082_v18 = vld [vmem:[%s4853_s4 + $0x10] sm:$0xff] (%p1075_p3) }
 0x288   : > { %1154 = vperm.xlu1 (%p1075_p3), %3445, %v1088_v11   ;;  %1114 = vperm.xlu0 (%p1075_p3), %3444, %v1080_v12   ;;  %v4101_v16 = vld [vmem:[#allocation3 + $0x40] sm:$0xff] (%p1075_p3)  ;;  %v4109_v21 = vld [vmem:[#allocation3 + $0x48] sm:$0xff] (%p1075_p3)  ;;  %v1091_v23 = vld [vmem:[%s4853_s4 + $0x58] sm:$0xff] (%p1075_p3) }
 0x289   : > { %1910 = vst [vmem:[#allocation3 + $0x40] sm:$0xff] (%p1075_p3), %v3776_v19  ;;  %v1096_v20 = vld [vmem:[#allocation3] sm:$0xff] (%p1075_p3)  ;;  %v4111_v22 = vld [vmem:[#allocation3 + $0x8] sm:$0xff] (%p1075_p3)  ;;  %1911 = vst [vmem:[#allocation3 + $0x48] sm:$0xff] (%p1075_p3), %v3776_v19 }
 0x28a   : > { %1902 = vst [vmem:[#allocation3] sm:$0xff] (%p1075_p3), %v3776_v19  ;;  %1903 = vst [vmem:[#allocation3 + $0x8] sm:$0xff] (%p1075_p3), %v3776_v19  ;;  %v1090_v24 = vld [vmem:[%s4853_s4 + $0x50] sm:$0xff] (%p1075_p3)  ;;  %v4119_v25 = vld [vmem:[#allocation3 + $0x18] sm:$0xff] (%p1075_p3) }
 0x28b   : > { %v4121_v26 = vld [vmem:[#allocation3 + $0x10] sm:$0xff] (%p1075_p3)  ;;  %1905 = vst [vmem:[#allocation3 + $0x18] sm:$0xff] (%p1075_p3), %v3776_v19  ;;  %v4123_v27 = vld [vmem:[#allocation3 + $0x58] sm:$0xff] (%p1075_p3)  ;;  %v1085_v29 = vld [vmem:[%s4853_s4 + $0x28] sm:$0xff] (%p1075_p3) }
 0x28c   : > { %1159 = vperm.xlu1 (%p1075_p3), %3445, %v1089_v14   ;;  %1119 = vperm.xlu0 (%p1075_p3), %3444, %v1081_v15   ;;  %1904 = vst [vmem:[#allocation3 + $0x10] sm:$0xff] (%p1075_p3), %v3776_v19  ;;  %v4125_v28 = vld [vmem:[#allocation3 + $0x50] sm:$0xff] (%p1075_p3)  ;;  %v1084_v30 = vld [vmem:[%s4853_s4 + $0x20] sm:$0xff] (%p1075_p3)  ;;  %1913 = vst [vmem:[#allocation3 + $0x58] sm:$0xff] (%p1075_p3), %v3776_v19 }
 0x28d   : > { %1912 = vst [vmem:[#allocation3 + $0x50] sm:$0xff] (%p1075_p3), %v3776_v19  ;;  %v4133_v31 = vld [vmem:[#allocation3 + $0x28] sm:$0xff] (%p1075_p3)  ;;  %v4135_v32 = vld [vmem:[#allocation3 + $0x20] sm:$0xff] (%p1075_p3)  ;;  %v1087_v37 = vld [vmem:[%s4853_s4 + $0x38] sm:$0xff] (%p1075_p3) }
 0x28e   : > { %v1093_v33 = vld [vmem:[%s4853_s4 + $0x68] sm:$0xff]  ;;  %v1092_v34 = vld [vmem:[%s4853_s4 + $0x60] sm:$0xff]  ;;  %1907 = vst [vmem:[#allocation3 + $0x28] sm:$0xff] %v3776_v19  ;;  %1906 = vst [vmem:[#allocation3 + $0x20] sm:$0xff] %v3776_v19 }
 0x28f   : > { %v4143_v35 = vld [vmem:[#allocation3 + $0x68] sm:$0xff]  ;;  %v4145_v36 = vld [vmem:[#allocation3 + $0x60] sm:$0xff]  ;;  %v1086_v38 = vld [vmem:[%s4853_s4 + $0x30] sm:$0xff] }
 0x290   : > { %1129 = vperm.xlu1 %3445, %v1083_v17   ;;  %1124 = vperm.xlu0 %3444, %v1082_v18   ;;  %1915 = vst [vmem:[#allocation3 + $0x68] sm:$0xff] %v3776_v19  ;;  %1914 = vst [vmem:[#allocation3 + $0x60] sm:$0xff] %v3776_v19  ;;  %v4153_v39 = vld [vmem:[#allocation3 + $0x38] sm:$0xff]  ;;  %v4155_v40 = vld [vmem:[#allocation3 + $0x30] sm:$0xff] }
 0x291   : > { %v1095_v41 = vld [vmem:[%s4853_s4 + $0x78] sm:$0xff]  ;;  %v1094_v42 = vld [vmem:[%s4853_s4 + $0x70] sm:$0xff]  ;;  %1909 = vst [vmem:[#allocation3 + $0x38] sm:$0xff] %v3776_v19  ;;  %1908 = vst [vmem:[#allocation3 + $0x30] sm:$0xff] %v3776_v19 }
 0x292   : > { %v4163_v43 = vld [vmem:[#allocation3 + $0x78] sm:$0xff]  ;;  %v4165_v44 = vld [vmem:[#allocation3 + $0x70] sm:$0xff]  ;;  %v1212_v45 = vld [vmem:[#allocation2 + $0x20] sm:$0xff] }
 0x293   : > { %1917 = vst [vmem:[#allocation3 + $0x78] sm:$0xff] %v3776_v19  ;;  %1916 = vst [vmem:[#allocation3 + $0x70] sm:$0xff] %v3776_v19  ;;  %v1208_v46 = vld [vmem:[#allocation2] sm:$0xff]  ;;  %v1224_v47 = vunpack.c.l.bf16 %v1212_v45  ;;  %v1225_v51 = vunpack.c.h.bf16 %v1212_v45  ;;  %v1209_v56 = vld [vmem:[#allocation2 + $0x8] sm:$0xff] }
 0x294   : > { %1169 = vperm.xlu1 %3445, %v1091_v23   ;;  %1164 = vperm.xlu0 %3444, %v1090_v24   ;;  %v1216_v48 = vunpack.c.l.bf16 %v1208_v46  ;;  %v4179_v57 = vld [vmem:[%s4857_s8] ss:$0 sm:$0xff]  ;;  %v1217_v58 = vunpack.c.h.bf16 %v1208_v46  ;;  %v1219_v63 = vunpack.c.h.bf16 %v1209_v56  ;;  %v1213_v4 = vld [vmem:[#allocation2 + $0x28] sm:$0xff]  ;;  %v1218_v7 = vunpack.c.l.bf16 %v1209_v56  ;;  %v1210_v9 = vld [vmem:[#allocation2 + $0x10] sm:$0xff] }
 0x295   : > { %v1227_v14 = vunpack.c.h.bf16 %v1213_v4  ;;  %v1226_v15 = vunpack.c.l.bf16 %v1213_v4  ;;  %v1221_v23 = vunpack.c.h.bf16 %v1210_v9 }
 0x298   : > { %1139 = vperm.xlu1 %3445, %v1085_v29   ;;  %1134 = vperm.xlu0 %3444, %v1084_v30  }
 0x29c   : > { %1179 = vperm.xlu1 %3445, %v1093_v33   ;;  %1174 = vperm.xlu0 %3444, %v1092_v34   ;;  %v1220_v33 = vunpack.c.l.bf16 %v1210_v9 }
 0x2a0   : > { %1149 = vperm.xlu1 %3445, %v1087_v37   ;;  %1144 = vperm.xlu0 %3444, %v1086_v38   ;;  %v4220_v37 = vld [vmem:[#allocation2 + $0x18] sm:$0xff] }
 0x2a4   : > { %1189 = vperm.xlu1 %3445, %v1095_v41   ;;  %1184 = vperm.xlu0 %3444, %v1094_v42  }
 0x307   : > { %v4167_v49 = vpop.permute.xlu1 %1154  ;;  %v4169_v50 = vpop.permute.xlu0 %1114 }
 0x308   : > { %v1200_v52 = vmul.f32 %v4167_v49, %v4101_v16  ;;  %v1240_v53 = vmul.f32 %v1224_v47, %v4167_v49  ;;  %v1192_v54 = vmul.f32 %v4169_v50, %v1096_v20  ;;  %v1232_v55 = vmul.f32 %v1216_v48, %v4169_v50  ;;  %v4202_v16 = vld [vmem:[#allocation2 + $0x30] sm:$0xff] }
 0x309   : > { %v1229_v34 = vunpack.c.h.bf16 %v4202_v16 }
 0x30a   : > { %v1256_v59 = vadd.f32 %v1240_v53, %v1200_v52  ;;  %v1248_v60 = vadd.f32 %v1232_v55, %v1192_v54  ;;  %v1228_v52 = vunpack.c.l.bf16 %v4202_v16  ;;  %v1223_v54 = vunpack.c.h.bf16 %v4220_v37  ;;  %v4237_v55 = vld [vmem:[#allocation2 + $0x38] sm:$0xff] }
 0x30b   : > { %v4181_v61 = vpop.permute.xlu1 %1159  ;;  %v4183_v62 = vpop.permute.xlu0 %1119 }
 0x30c   : > { %v4186_v0 = vadd.f32 %v4179_v57, %v1256_v59  ;;  %v4189_v1 = vadd.f32 %v4179_v57, %v1248_v60  ;;  %v1201_v2 = vmul.f32 %v4181_v61, %v4109_v21  ;;  %v1241_v3 = vmul.f32 %v1225_v51, %v4181_v61 }
 0x30d   : > { %v1193_v5 = vmul.f32 %v4183_v62, %v4111_v22  ;;  %v1233_v6 = vmul.f32 %v1217_v58, %v4183_v62 }
 0x30e   : > { %v1257_v8 = vadd.f32 %v1241_v3, %v1201_v2  ;;  %v1303_v10 = vmul.f32 0.044715, %v4189_v1  ;;  %v1311_v17 = vmul.f32 0.044715, %v4186_v0 }
 0x30f   : > { %v1249_v11 = vadd.f32 %v1233_v6, %v1193_v5  ;;  %v4198_v12 = vpop.permute.xlu1 %1129  ;;  %v4200_v13 = vpop.permute.xlu0 %1124 }
 0x310   : > { %v4206_v18 = vadd.f32 %v4179_v57, %v1257_v8  ;;  %v1195_v19 = vmul.f32 %v4198_v12, %v4119_v25  ;;  %v1235_v20 = vmul.f32 %v1219_v63, %v4198_v12  ;;  %v1194_v21 = vmul.f32 %v4200_v13, %v4121_v26 }
 0x311   : > { %v1234_v22 = vmul.f32 %v1218_v7, %v4200_v13  ;;  %v1319_v24 = vmul.f32 %v1303_v10, %v4189_v1  ;;  %v1327_v29 = vmul.f32 %v1311_v17, %v4186_v0  ;;  %v4217_v30 = vadd.f32 %v4179_v57, %v1249_v11 }
 0x312   : > { %v1312_v25 = vmul.f32 0.044715, %v4206_v18  ;;  %v1251_v38 = vadd.f32 %v1235_v20, %v1195_v19  ;;  %v1231_v10 = vunpack.c.h.bf16 %v4237_v55 }
 0x313   : > { %v1250_v41 = vadd.f32 %v1234_v22, %v1194_v21  ;;  %v4223_v26 = vpop.permute.xlu1 %1169  ;;  %v4225_v42 = vpop.permute.xlu0 %1164  ;;  %v1335_v45 = vmul.f32 %v1319_v24, %v4189_v1  ;;  %v1343_v46 = vmul.f32 %v1327_v29, %v4186_v0  ;;  %v1304_v60 = vmul.f32 0.044715, %v4217_v30 }
 0x314   : > { %v1203_v47 = vmul.f32 %v4223_v26, %v4123_v27  ;;  %v1243_v48 = vmul.f32 %v1227_v14, %v4223_v26  ;;  %v1202_v51 = vmul.f32 %v4225_v42, %v4125_v28  ;;  %v1242_v53 = vmul.f32 %v1226_v15, %v4225_v42 }
 0x315   : > { %v1351_v56 = vadd.f32 %v1335_v45, %v4189_v1  ;;  %v1359_v58 = vadd.f32 %v1343_v46, %v4186_v0  ;;  %v4242_v59 = vadd.f32 %v4179_v57, %v1250_v41  ;;  %v1222_v27 = vunpack.c.l.bf16 %v4220_v37 }
 0x316   : > { %v1328_v28 = vmul.f32 %v1312_v25, %v4206_v18  ;;  %v4248_v63 = vadd.f32 %v4179_v57, %v1251_v38  ;;  %v1258_v2 = vadd.f32 %v1242_v53, %v1202_v51  ;;  %v1259_v7 = vadd.f32 %v1243_v48, %v1203_v47 }
 0x317   : > { %v4250_v3 = vpop.permute.xlu1 %1139  ;;  %v4252_v4 = vpop.permute.xlu0 %1134  ;;  %v1367_v5 = vmul.f32 0.7978846, %v1351_v56  ;;  %v1375_v6 = vmul.f32 0.7978846, %v1359_v58  ;;  %v1320_v15 = vmul.f32 %v1304_v60, %v4217_v30  ;;  %v1230_v21 = vunpack.c.l.bf16 %v4237_v55 }
 0x318   : > { %v1197_v8 = vmul.f32 %v4250_v3, %v4133_v31  ;;  %v1237_v9 = vmul.f32 %v1221_v23, %v4250_v3  ;;  %v4259_v11 = vadd.f32 %v4179_v57, %v1258_v2  ;;  %v1196_v14 = vmul.f32 %v4252_v4, %v4135_v32 }
 0x319   : > { %3454 = vtanh.f32 %v1367_v5  ;;  %v1236_v16 = vmul.f32 %v1220_v33, %v4252_v4  ;;  %v1344_v17 = vmul.f32 %v1328_v28, %v4206_v18  ;;  %v1305_v31 = vmul.f32 0.044715, %v4242_v59 }
 0x31a   : > { %3456 = vtanh.f32 %v1375_v6  ;;  %v1287_v22 = vmul.f32 0.5, %v4189_v1  ;;  %v1336_v32 = vmul.f32 %v1320_v15, %v4217_v30  ;;  %v1306_v23 = vmul.f32 0.044715, %v4248_v63 }
 0x31b   : > { %v4267_v19 = vpop.permute.xlu1 %1179  ;;  %v4269_v20 = vpop.permute.xlu0 %1174  ;;  %v4279_v33 = vmul.f32 0.5, %v4186_v0  ;;  %v4282_v37 = vmul.f32 0.5, %v4206_v18  ;;  %v4285_v25 = vadd.f32 %v4179_v57, %v1259_v7  ;;  %v1253_v38 = vadd.f32 %v1237_v9, %v1197_v8 }
 0x31c   : > { %v1205_v24 = vmul.f32 %v4267_v19, %v4143_v35  ;;  %v1245_v29 = vmul.f32 %v1229_v34, %v4267_v19  ;;  %v1352_v1 = vadd.f32 %v1336_v32, %v4217_v30  ;;  %v1360_v41 = vadd.f32 %v1344_v17, %v4206_v18 }
 0x31d   : > { %v1252_v45 = vadd.f32 %v1236_v16, %v1196_v14  ;;  %v1321_v46 = vmul.f32 %v1305_v31, %v4242_v59  ;;  %v1322_v35 = vmul.f32 %v1306_v23, %v4248_v63  ;;  %v1313_v34 = vmul.f32 0.044715, %v4259_v11 }
 0x31e   : > { %v1204_v0 = vmul.f32 %v4269_v20, %v4145_v36  ;;  %v1244_v47 = vmul.f32 %v1228_v52, %v4269_v20  ;;  %v1368_v53 = vmul.f32 0.7978846, %v1352_v1  ;;  %v1376_v55 = vmul.f32 0.7978846, %v1360_v41 }
 0x31f   : > { %v4295_v48 = vpop.permute.xlu1 %1149  ;;  %v4297_v51 = vpop.permute.xlu0 %1144  ;;  %v1261_v56 = vadd.f32 %v1245_v29, %v1205_v24  ;;  %v1288_v36 = vmul.f32 0.5, %v4217_v30  ;;  %v1337_v52 = vmul.f32 %v1321_v46, %v4242_v59  ;;  %v4308_v2 = vmul.f32 0.5, %v4248_v63 }
 0x320   : > { %v1199_v18 = vmul.f32 %v4295_v48, %v4153_v39  ;;  %v1239_v58 = vmul.f32 %v1223_v54, %v4295_v48  ;;  %v1198_v60 = vmul.f32 %v4297_v51, %v4155_v40  ;;  %v1238_v28 = vmul.f32 %v1222_v27, %v4297_v51 }
 0x321   : > { %3458 = vtanh.f32 %v1368_v53  ;;  %v1338_v5 = vmul.f32 %v1322_v35, %v4248_v63  ;;  %v1329_v39 = vmul.f32 %v1313_v34, %v4259_v11  ;;  %v4313_v54 = vadd.f32 %v4179_v57, %v1253_v38 }
 0x322   : > { %3460 = vtanh.f32 %v1376_v55  ;;  %v1260_v40 = vadd.f32 %v1244_v47, %v1204_v0  ;;  %v1353_v30 = vadd.f32 %v1337_v52, %v4242_v59  ;;  %v1314_v8 = vmul.f32 0.044715, %v4285_v25 }
 0x323   : > { %v3455_v6 = vpop.eup %3454  ;;  %v4315_v7 = vpop.permute.xlu1 %1189  ;;  %v4322_v14 = vadd.f32 %v4179_v57, %v1252_v45  ;;  %v4325_v15 = vadd.f32 %v4179_v57, %v1261_v56  ;;  %v1255_v16 = vadd.f32 %v1239_v58, %v1199_v18  ;;  %v1254_v17 = vadd.f32 %v1238_v28, %v1198_v60 }
 0x324   : > { %v4317_v27 = vpop.permute.xlu0 %1184  ;;  %v3457_v9 = vpop.eup %3456  ;;  %v1207_v31 = vmul.f32 %v4315_v7, %v4163_v43  ;;  %v1247_v32 = vmul.f32 %v1231_v10, %v4315_v7  ;;  %v1399_v24 = vadd.f32 1.0, %v3455_v6  ;;  %v1369_v38 = vmul.f32 0.7978846, %v1353_v30 }
 0x325   : > { %v1206_v23 = vmul.f32 %v4317_v27, %v4165_v44  ;;  %v1246_v29 = vmul.f32 %v1230_v21, %v4317_v27  ;;  %v1354_v1 = vadd.f32 %v1338_v5, %v4248_v63  ;;  %v1345_v41 = vmul.f32 %v1329_v39, %v4259_v11 }
 0x326   : > { %v4336_v45 = vadd.f32 %v4179_v57, %v1260_v40  ;;  %v4338_v46 = vmul.f32 %v1399_v24, %v1287_v22  ;;  %v1407_v35 = vadd.f32 1.0, %v3457_v9  ;;  %v1330_v43 = vmul.f32 %v1314_v8, %v4285_v25 }
 0x327   : > { %v4342_v10 = vadd.f32 %v4179_v57, %v1255_v16  ;;  %3462 = vtanh.f32 %v1369_v38  ;;  %v1370_v44 = vmul.f32 0.7978846, %v1354_v1  ;;  %v1361_v21 = vadd.f32 %v1345_v41, %v4259_v11 }
 0x328   : > { %v4346_v34 = vadd.f32 %v4179_v57, %v1254_v17  ;;  %v1263_v63 = vadd.f32 %v1247_v32, %v1207_v31  ;;  %1431 = vadd.xlane.f32.xlu0 %v4338_v46  ;;  %v1346_v0 = vmul.f32 %v1330_v43, %v4285_v25  ;;  %v1307_v22 = vmul.f32 0.044715, %v4322_v14 }
 0x329   : > { %v1262_v47 = vadd.f32 %v1246_v29, %v1206_v23  ;;  %3464 = vtanh.f32 %v1370_v44  ;;  %v1377_v53 = vmul.f32 0.7978846, %v1361_v21  ;;  %v1308_v55 = vmul.f32 0.044715, %v4313_v54 }
 0x32a   : > { %v4353_v18 = vmul.f32 %v1407_v35, %v4279_v33  ;;  %v1362_v58 = vadd.f32 %v1346_v0, %v4285_v25  ;;  %v1323_v60 = vmul.f32 %v1307_v22, %v4322_v14  ;;  %v1315_v28 = vmul.f32 0.044715, %v4336_v45 }
 0x32b   : > { %v3459_v56 = vpop.eup %3458  ;;  %3466 = vtanh.f32 %v1377_v53  ;;  %v1324_v39 = vmul.f32 %v1308_v55, %v4313_v54  ;;  %v1316_v6 = vmul.f32 0.044715, %v4325_v15  ;;  %v4364_v9 = vadd.f32 %v4179_v57, %v1262_v47 }
 0x32c   : > { %v3461_v52 = vpop.eup %3460  ;;  %v1400_v5 = vadd.f32 1.0, %v3459_v56  ;;  %1447 = vadd.xlane.f32.xlu0 %v4353_v18  ;;  %v1378_v30 = vmul.f32 0.7978846, %v1362_v58  ;;  %v1339_v33 = vmul.f32 %v1323_v60, %v4322_v14  ;;  %v1331_v8 = vmul.f32 %v1315_v28, %v4336_v45 }
 0x32d   : > { %v1408_v40 = vadd.f32 1.0, %v3461_v52  ;;  %v1340_v17 = vmul.f32 %v1324_v39, %v4313_v54  ;;  %v1332_v31 = vmul.f32 %v1316_v6, %v4325_v15  ;;  %v1289_v29 = vmul.f32 0.5, %v4242_v59 }
 0x32e   : > { %v4366_v16 = vmul.f32 %v1400_v5, %v1288_v36  ;;  %3468 = vtanh.f32 %v1378_v30  ;;  %v1355_v23 = vadd.f32 %v1339_v33, %v4322_v14  ;;  %v1347_v24 = vmul.f32 %v1331_v8, %v4336_v45 }
 0x32f   : > { %v4371_v32 = vmul.f32 %v1408_v40, %v4282_v37  ;;  %v1356_v38 = vadd.f32 %v1340_v17, %v4313_v54  ;;  %v1348_v36 = vmul.f32 %v1332_v31, %v4325_v15  ;;  %v1309_v1 = vmul.f32 0.044715, %v4346_v34 }
 0x330   : > { %1433 = vadd.xlane.f32.xlu1 %v4366_v16  ;;  %v4381_v41 = vadd.f32 %v4179_v57, %v1263_v63  ;;  %v1371_v37 = vmul.f32 0.7978846, %v1355_v23  ;;  %v1363_v35 = vadd.f32 %v1347_v24, %v4336_v45  ;;  %v1310_v43 = vmul.f32 0.044715, %v4342_v10 }
 0x331   : > { %1449 = vadd.xlane.f32.xlu0 %v4371_v32  ;;  %v3463_v44 = vpop.eup %3462  ;;  %v1372_v21 = vmul.f32 0.7978846, %v1356_v38  ;;  %v1364_v59 = vadd.f32 %v1348_v36, %v4325_v15  ;;  %v1325_v0 = vmul.f32 %v1309_v1, %v4346_v34  ;;  %v1317_v22 = vmul.f32 0.044715, %v4364_v9 }
 0x332   : > { %v1401_v47 = vadd.f32 1.0, %v3463_v44  ;;  %3470 = vtanh.f32 %v1371_v37  ;;  %v1379_v53 = vmul.f32 0.7978846, %v1363_v35  ;;  %v1326_v57 = vmul.f32 %v1310_v43, %v4342_v10 }
 0x333   : > { %v3465_v63 = vpop.eup %3464  ;;  %3472 = vtanh.f32 %v1372_v21  ;;  %v1380_v55 = vmul.f32 0.7978846, %v1364_v59  ;;  %v1341_v56 = vmul.f32 %v1325_v0, %v4346_v34  ;;  %v1333_v58 = vmul.f32 %v1317_v22, %v4364_v9 }
 0x334   : > { %v4392_v60 = vmul.f32 %v1401_v47, %v1289_v29  ;;  %v1402_v28 = vadd.f32 1.0, %v3465_v63  ;;  %3474 = vtanh.f32 %v1379_v53  ;;  %v1342_v52 = vmul.f32 %v1326_v57, %v4342_v10 }
 0x335   : > { %v3467_v5 = vpop.eup %3466  ;;  %v1297_v39 = vmul.f32 0.5, %v4259_v11  ;;  %3476 = vtanh.f32 %v1380_v55  ;;  %v1357_v6 = vadd.f32 %v1341_v56, %v4346_v34  ;;  %v1349_v40 = vmul.f32 %v1333_v58, %v4364_v9 }
 0x336   : > { %1435 = vadd.xlane.f32.xlu1 %v4392_v60  ;;  %v4400_v30 = vmul.f32 %v1402_v28, %v4308_v2  ;;  %v1409_v33 = vadd.f32 1.0, %v3467_v5  ;;  %v1358_v8 = vadd.f32 %v1342_v52, %v4342_v10  ;;  %v1318_v17 = vmul.f32 0.044715, %v4381_v41 }
 0x337   : > { %v1373_v31 = vmul.f32 0.7978846, %v1357_v6  ;;  %v1365_v23 = vadd.f32 %v1349_v40, %v4364_v9  ;;  %v1298_v36 = vmul.f32 0.5, %v4285_v25  ;;  %v1291_v59 = vmul.f32 0.5, %v4322_v14 }
 0x338   : > { %v3469_v24 = vpop.eup %3468  ;;  %1437 = vadd.xlane.f32.xlu0 %v4400_v30  ;;  %v4406_v11 = vmul.f32 %v1409_v33, %v1297_v39  ;;  %v1374_v29 = vmul.f32 0.7978846, %v1358_v8  ;;  %v1334_v38 = vmul.f32 %v1318_v17, %v4381_v41  ;;  %v1292_v22 = vmul.f32 0.5, %v4313_v54 }
 0x339   : > { %v1410_v2 = vadd.f32 1.0, %v3469_v24  ;;  %3478 = vtanh.f32 %v1373_v31  ;;  %v1381_v1 = vmul.f32 0.7978846, %v1365_v23  ;;  %v1299_v55 = vmul.f32 0.5, %v4336_v45 }
 0x33a   : > { %1451 = vadd.xlane.f32.xlu1 %v4406_v11  ;;  %3480 = vtanh.f32 %v1374_v29  ;;  %v1350_v37 = vmul.f32 %v1334_v38, %v4381_v41  ;;  %v1300_v54 = vmul.f32 0.5, %v4325_v15  ;;  %v1293_v6 = vmul.f32 0.5, %v4346_v34 }
 0x33b   : > { %v4412_v35 = vmul.f32 %v1410_v2, %v1298_v36  ;;  %3482 = vtanh.f32 %v1381_v1  ;;  %v1294_v17 = vmul.f32 0.5, %v4342_v10  ;;  %v1301_v15 = vmul.f32 0.5, %v4364_v9 }
 0x33c   : > { %v3471_v43 = vpop.eup %3470  ;;  %v1366_v44 = vadd.f32 %v1350_v37, %v4381_v41  ;;  %v1302_v29 = vmul.f32 0.5, %v4381_v41 }
 0x33d   : > { %v3473_v21 = vpop.eup %3472  ;;  %1453 = vadd.xlane.f32.xlu0 %v4412_v35  ;;  %v1403_v25 = vadd.f32 1.0, %v3471_v43 }
 0x33e   : > { %v3475_v0 = vpop.eup %3474  ;;  %v1404_v47 = vadd.f32 1.0, %v3473_v21  ;;  %v1382_v53 = vmul.f32 0.7978846, %v1366_v44 }
 0x33f   : > { %v3477_v57 = vpop.eup %3476  ;;  %v4418_v63 = vmul.f32 %v1403_v25, %v1291_v59  ;;  %v1411_v56 = vadd.f32 1.0, %v3475_v0 }
 0x340   : > { %v4421_v58 = vmul.f32 %v1404_v47, %v1292_v22  ;;  %v1412_v28 = vadd.f32 1.0, %v3477_v57  ;;  %3484 = vtanh.f32 %v1382_v53 }
 0x341   : > { %1439 = vadd.xlane.f32.xlu1 %v4418_v63  ;;  %v4424_v52 = vmul.f32 %v1411_v56, %v1299_v55 }
 0x342   : > { %1441 = vadd.xlane.f32.xlu0 %v4421_v58  ;;  %v4428_v39 = vmul.f32 %v1412_v28, %v1300_v54 }
 0x343   : > { %v3479_v14 = vpop.eup %3478 }
 0x344   : > { %v3481_v5 = vpop.eup %3480  ;;  %v1405_v45 = vadd.f32 1.0, %v3479_v14 }
 0x345   : > { %v3483_v40 = vpop.eup %3482  ;;  %1455 = vadd.xlane.f32.xlu1 %v4424_v52  ;;  %v1406_v33 = vadd.f32 1.0, %v3481_v5 }
 0x346   : > { %1457 = vadd.xlane.f32.xlu0 %v4428_v39  ;;  %v4433_v8 = vmul.f32 %v1405_v45, %v1293_v6  ;;  %v1413_v31 = vadd.f32 1.0, %v3483_v40 }
 0x347   : > { %v4437_v23 = vmul.f32 %v1406_v33, %v1294_v17 }
 0x348   : > { %v4440_v24 = vmul.f32 %v1413_v31, %v1301_v15 }
 0x349   : > { %1443 = vadd.xlane.f32.xlu1 %v4433_v8 }
 0x34a   : > { %v3485_v34 = vpop.eup %3484  ;;  %1445 = vadd.xlane.f32.xlu0 %v4437_v23 }
 0x34b   : > { %v1414_v38 = vadd.f32 1.0, %v3485_v34 }
 0x34d   : > { %1459 = vadd.xlane.f32.xlu1 %v4440_v24  ;;  %v4445_v36 = vmul.f32 %v1414_v38, %v1302_v29 }
 0x34f   : > { %1461 = vadd.xlane.f32.xlu0 %v4445_v36 }
 0x3b5   : > { %v1432_v10 = vpop.xlane.xlu0 %1431 }
 0x3b6   : > { %v4448_v9 = vmul.f32 0.03125, %v1432_v10 }
 0x3b8   : > { %v4452_v2 = vsub.f32 %v4338_v46, %v4448_v9 }
 0x3b9   : > { %v1448_v1 = vpop.xlane.xlu0 %1447 }
 0x3ba   : > { %v4454_v37 = vmul.f32 0.03125, %v1448_v1  ;;  %v1495_v41 = vmul.f32 %v4452_v2, %v4452_v2 }
 0x3bc   : > { %1511 = vadd.xlane.f32.xlu1 %v1495_v41  ;;  %v4460_v44 = vsub.f32 %v4353_v18, %v4454_v37 }
 0x3bd   : > { %v1434_v43 = vpop.xlane.xlu1 %1433 }
 0x3be   : > { %v4462_v21 = vmul.f32 0.03125, %v1434_v43  ;;  %v1450_v59 = vpop.xlane.xlu0 %1449  ;;  %v1503_v46 = vmul.f32 %v4460_v44, %v4460_v44 }
 0x3bf   : > { %v4464_v25 = vmul.f32 0.03125, %v1450_v59 }
 0x3c0   : > { %v4470_v0 = vsub.f32 %v4366_v16, %v4462_v21  ;;  %1527 = vadd.xlane.f32.xlu1 %v1503_v46 }
 0x3c1   : > { %v4474_v22 = vsub.f32 %v4371_v32, %v4464_v25 }
 0x3c2   : > { %v1496_v18 = vmul.f32 %v4470_v0, %v4470_v0 }
 0x3c3   : > { %v1436_v47 = vpop.xlane.xlu1 %1435  ;;  %v1504_v53 = vmul.f32 %v4474_v22, %v4474_v22 }
 0x3c4   : > { %1513 = vadd.xlane.f32.xlu0 %v1496_v18  ;;  %v4480_v57 = vmul.f32 0.03125, %v1436_v47 }
 0x3c5   : > { %v1438_v55 = vpop.xlane.xlu0 %1437 }
 0x3c6   : > { %v4482_v56 = vmul.f32 0.03125, %v1438_v55  ;;  %v4486_v16 = vsub.f32 %v4392_v60, %v4480_v57 }
 0x3c7   : > { %v1452_v28 = vpop.xlane.xlu1 %1451 }
 0x3c8   : > { %1529 = vadd.xlane.f32.xlu0 %v1504_v53  ;;  %v4488_v32 = vmul.f32 0.03125, %v1452_v28  ;;  %v1497_v54 = vmul.f32 %v4486_v16, %v4486_v16  ;;  %v4494_v14 = vsub.f32 %v4400_v30, %v4482_v56  ;;  %v3446_v53 = vld [vmem:[#allocation12] sm:$0xff]  }
 0x3c9   : > { %3171 = vmatprep.subr.bf16.mxu0 %v3446_v53  ;;  %3310 = vmatprep.subr.bf16.mxu1 %v3446_v53 }
 0x3ca   : > { %1515 = vadd.xlane.f32.xlu1 %v1497_v54  ;;  %v1454_v5 = vpop.xlane.xlu0 %1453  ;;  %v4498_v6 = vsub.f32 %v4406_v11, %v4488_v32  ;;  %v1498_v60 = vmul.f32 %v4494_v14, %v4494_v14  ;;  %3172 = vmatpush3.bf16.msra.mxu0 %v3446_v53 }
 0x3cb   : > { %v4502_v45 = vmul.f32 0.03125, %v1454_v5  ;;  %3318 = vmatpush3.bf16.msra.mxu1 %v3446_v53 }
 0x3cc   : > { %v1505_v40 = vmul.f32 %v4498_v6, %v4498_v6  ;;  %1517 = vadd.xlane.f32.xlu0 %v1498_v60 }
 0x3cd   : > { %v4508_v33 = vsub.f32 %v4412_v35, %v4502_v45 }
 0x3ce   : > { %v1440_v30 = vpop.xlane.xlu1 %1439  ;;  %1531 = vadd.xlane.f32.xlu1 %v1505_v40 }
 0x3cf   : > { %v4510_v17 = vmul.f32 0.03125, %v1440_v30  ;;  %v1442_v31 = vpop.xlane.xlu0 %1441  ;;  %v1506_v11 = vmul.f32 %v4508_v33, %v4508_v33 }
 0x3d0   : > { %v4514_v15 = vmul.f32 0.03125, %v1442_v31 }
 0x3d1   : > { %v4518_v34 = vsub.f32 %v4418_v63, %v4510_v17  ;;  %1533 = vadd.xlane.f32.xlu0 %v1506_v11 }
 0x3d2   : > { %v1456_v29 = vpop.xlane.xlu1 %1455  ;;  %v4522_v35 = vsub.f32 %v4421_v58, %v4514_v15 }
 0x3d3   : > { %v4524_v38 = vmul.f32 0.03125, %v1456_v29  ;;  %v1499_v10 = vmul.f32 %v4518_v34, %v4518_v34  ;;  %v1458_v1 = vpop.xlane.xlu0 %1457 }
 0x3d4   : > { %v4528_v41 = vmul.f32 0.03125, %v1458_v1  ;;  %v1500_v43 = vmul.f32 %v4522_v35, %v4522_v35 }
 0x3d5   : > { %1519 = vadd.xlane.f32.xlu1 %v1499_v10  ;;  %v4534_v63 = vsub.f32 %v4424_v52, %v4524_v38  ;;  %v3448_v10 = vld [vmem:[#allocation12 + $0x10] sm:$0xff]  }
 0x3d6   : > { %v1444_v59 = vpop.xlane.xlu1 %1443  ;;  %1521 = vadd.xlane.f32.xlu0 %v1500_v43  ;;  %v4538_v58 = vsub.f32 %v4428_v39, %v4528_v41  ;;  %v3450_v43 = vld [vmem:[#allocation12 + $0x20] sm:$0xff]  }
 0x3d7   : > { %v4540_v46 = vmul.f32 0.03125, %v1444_v59  ;;  %v1507_v18 = vmul.f32 %v4534_v63, %v4534_v63  ;;  %v1446_v47 = vpop.xlane.xlu0 %1445  ;;  %v3452_v59 = vld [vmem:[#allocation12 + $0x30] sm:$0xff]  }
 0x3d8   : > { %v4544_v55 = vmul.f32 0.03125, %v1446_v47  ;;  %v1508_v28 = vmul.f32 %v4538_v58, %v4538_v58  ;;  %v1543_v47 = vmul.f32 96.0, %v4448_v9 }
 0x3d9   : > { %1535 = vadd.xlane.f32.xlu1 %v1507_v18  ;;  %v4550_v52 = vsub.f32 %v4433_v8, %v4540_v46  ;;  %v3447_v8 = vld [vmem:[#allocation12 + $0x8] sm:$0xff]   ;;  %v3453_v18 = vld [vmem:[#allocation12 + $0x38] sm:$0xff]  }
 0x3da   : > { %v1460_v39 = vpop.xlane.xlu1 %1459  ;;  %1537 = vadd.xlane.f32.xlu0 %v1508_v28  ;;  %v4554_v54 = vsub.f32 %v4437_v23, %v4544_v55  ;;  %3173 = vmatprep.subr.bf16.mxu0 %v3447_v8  ;;  %v1559_v53 = vmul.f32 %v1543_v47, %v4448_v9  ;;  %v1551_v28 = vmul.f32 96.0, %v4454_v37  ;;  %v1545_v47 = vmul.f32 96.0, %v4480_v57 }
 0x3db   : > { %v4556_v5 = vmul.f32 0.03125, %v1460_v39  ;;  %v1501_v60 = vmul.f32 %v4550_v52, %v4550_v52  ;;  %3174 = vmatpush3.bf16.msra.mxu0 %v3447_v8  ;;  %3311 = vmatprep.subr.bf16.mxu1 %v3447_v8 }
 0x3dc   : > { %v1462_v40 = vpop.xlane.xlu0 %1461  ;;  %v1502_v30 = vmul.f32 %v4554_v54, %v4554_v54  ;;  %3319 = vmatpush3.bf16.msra.mxu1 %v3447_v8  ;;  %3175 = vmatprep.subr.bf16.mxu0 %v3448_v10  ;;  %v1567_v8 = vmul.f32 %v1551_v28, %v4454_v37  ;;  %v1546_v37 = vmul.f32 96.0, %v4482_v56 }
 0x3dd   : > { %1523 = vadd.xlane.f32.xlu1 %v1501_v60  ;;  %v4562_v31 = vmul.f32 0.03125, %v1462_v40  ;;  %v4566_v23 = vsub.f32 %v4440_v24, %v4556_v5  ;;  %3312 = vmatprep.subr.bf16.mxu1 %v3448_v10  ;;  %v3449_v24 = vld [vmem:[#allocation12 + $0x18] sm:$0xff]   ;;  %v1544_v40 = vmul.f32 96.0, %v4462_v21 }
 0x3de   : > { %1525 = vadd.xlane.f32.xlu0 %v1502_v30 }
 0x3df   : > { %v1509_v11 = vmul.f32 %v4566_v23, %v4566_v23  ;;  %v4572_v29 = vsub.f32 %v4445_v36, %v4562_v31  ;;  %3176 = vmatpush3.bf16.msra.mxu0 %v3448_v10  ;;  %v3451_v36 = vld [vmem:[#allocation12 + $0x28] sm:$0xff]  }
 0x3e0   : > { %3320 = vmatpush3.bf16.msra.mxu1 %v3448_v10  ;;  %3177 = vmatprep.subr.bf16.mxu0 %v3449_v24 }
 0x3e1   : > { %1539 = vadd.xlane.f32.xlu1 %v1509_v11  ;;  %v1510_v1 = vmul.f32 %v4572_v29, %v4572_v29  ;;  %3313 = vmatprep.subr.bf16.mxu1 %v3449_v24 }
 0x3e3   : > { %1541 = vadd.xlane.f32.xlu0 %v1510_v1  ;;  %3178 = vmatpush3.bf16.msra.mxu0 %v3449_v24 }
 0x3e4   : > { %3321 = vmatpush3.bf16.msra.mxu1 %v3449_v24  ;;  %3179 = vmatprep.subr.bf16.mxu0 %v3450_v43  ;;  %v1560_v24 = vmul.f32 %v1544_v40, %v4462_v21  ;;  %v1561_v21 = vmul.f32 %v1545_v47, %v4480_v57  ;;  %v1553_v40 = vmul.f32 96.0, %v4488_v32 }
 0x3e5   : > { %3314 = vmatprep.subr.bf16.mxu1 %v3450_v43 }
 0x3e7   : > { %3180 = vmatpush3.bf16.msra.mxu0 %v3450_v43 }
 0x3e8   : > { %3322 = vmatpush3.bf16.msra.mxu1 %v3450_v43  ;;  %3181 = vmatprep.subr.bf16.mxu0 %v3451_v36  ;;  %v1552_v43 = vmul.f32 96.0, %v4464_v25 }
 0x3e9   : > { %3315 = vmatprep.subr.bf16.mxu1 %v3451_v36 }
 0x3eb   : > { %3182 = vmatpush3.bf16.msra.mxu0 %v3451_v36 }
 0x3ec   : > { %3323 = vmatpush3.bf16.msra.mxu1 %v3451_v36  ;;  %3183 = vmatprep.subr.bf16.mxu0 %v3452_v59 }
 0x3ed   : > { %3316 = vmatprep.subr.bf16.mxu1 %v3452_v59 }
 0x3ef   : > { %3184 = vmatpush3.bf16.msra.mxu0 %v3452_v59 }
 0x3f0   : > { %3324 = vmatpush3.bf16.msra.mxu1 %v3452_v59  ;;  %3185 = vmatprep.subr.bf16.mxu0 %v3453_v18 }
 0x3f1   : > { %3317 = vmatprep.subr.bf16.mxu1 %v3453_v18 }
 0x3f3   : > { %3186 = vmatpush3.bf16.msra.mxu0 %v3453_v18 }
 0x3f4   : > { %3325 = vmatpush3.bf16.msra.mxu1 %v3453_v18 }
 0x449   : > { %v1512_v39 = vpop.xlane.xlu1 %1511 }
 0x44a   : > { %v1575_v60 = vsub.f32 %v1512_v39, %v1559_v53  ;;  %v1568_v39 = vmul.f32 %v1552_v43, %v4464_v25  ;;  %v1554_v25 = vmul.f32 96.0, %v4502_v45 }
 0x44c   : > { %v1591_v30 = vmul.f32 0.03125, %v1575_v60 }
 0x44d   : > { %v1528_v11 = vpop.xlane.xlu1 %1527 }
 0x44e   : > { %v1607_v10 = vadd.f32 1e-05, %v1591_v30  ;;  %v1583_v1 = vsub.f32 %v1528_v11, %v1567_v8 }
 0x450   : > { %3486 = vrsqrt.f32 %v1607_v10  ;;  %v1599_v36 = vmul.f32 0.03125, %v1583_v1  ;;  %v1562_v1 = vmul.f32 %v1546_v37, %v4482_v56 }
 0x451   : > { %v1514_v59 = vpop.xlane.xlu0 %1513 }
 0x452   : > { %v1576_v9 = vsub.f32 %v1514_v59, %v1560_v24  ;;  %v1615_v18 = vadd.f32 1e-05, %v1599_v36 }
 0x454   : > { %v1592_v53 = vmul.f32 0.03125, %v1576_v9  ;;  %3488 = vrsqrt.f32 %v1615_v18  ;;  %v1569_v9 = vmul.f32 %v1553_v40, %v4488_v32  ;;  %v4598_v32 = vld [vmem:[%s4858_s9] ss:$0 sm:$0xff] }
 0x455   : > { %v1530_v60 = vpop.xlane.xlu0 %1529 }
 0x456   : > { %v1608_v28 = vadd.f32 1e-05, %v1592_v53  ;;  %v1584_v30 = vsub.f32 %v1530_v60, %v1568_v39  ;;  %v1547_v60 = vmul.f32 96.0, %v4510_v17 }
 0x457   : > { %v1516_v8 = vpop.xlane.xlu1 %1515 }
 0x458   : > { %3490 = vrsqrt.f32 %v1608_v28  ;;  %v1600_v11 = vmul.f32 0.03125, %v1584_v30  ;;  %v1577_v10 = vsub.f32 %v1516_v8, %v1561_v21  ;;  %v1570_v28 = vmul.f32 %v1554_v25, %v4502_v45 }
 0x459   : > { %v1518_v36 = vpop.xlane.xlu0 %1517  ;;  %v1548_v8 = vmul.f32 96.0, %v4514_v15  ;;  %v1556_v45 = vmul.f32 96.0, %v4528_v41  ;;  %v1549_v25 = vmul.f32 96.0, %v4540_v46 }
 0x45a   : > { %v1616_v24 = vadd.f32 1e-05, %v1600_v11  ;;  %v3487_v43 = vpop.eup %3486  ;;  %v1593_v59 = vmul.f32 0.03125, %v1577_v10  ;;  %v1578_v18 = vsub.f32 %v1518_v36, %v1562_v1  ;;  %v1555_v1 = vmul.f32 96.0, %v4524_v38 }
 0x45b   : > { %v1532_v53 = vpop.xlane.xlu1 %1531  ;;  %v1639_v56 = vmul.f32 %v3487_v43, %v4452_v2 }
 0x45c   : > { %3492 = vrsqrt.f32 %v1616_v24  ;;  %v1609_v57 = vadd.f32 1e-05, %v1593_v59  ;;  %v1585_v47 = vsub.f32 %v1532_v53, %v1569_v9  ;;  %v1594_v39 = vmul.f32 0.03125, %v1578_v18  ;;  %v4610_v53 = vld [vmem:[%s4859_s10] ss:$0 sm:$0xff] }
 0x45d   : > { %v1563_v24 = vmul.f32 %v1547_v60, %v4510_v17  ;;  %v1662_v43 = vmul.f32 %v4598_v32, %v1639_v56  ;;  %v1564_v9 = vmul.f32 %v1548_v8, %v4514_v15  ;;  %v1550_v60 = vmul.f32 96.0, %v4544_v55 }
 0x45e   : > { %3494 = vrsqrt.f32 %v1609_v57  ;;  %v1601_v37 = vmul.f32 0.03125, %v1585_v47  ;;  %v1610_v30 = vadd.f32 1e-05, %v1594_v39  ;;  %v1534_v21 = vpop.xlane.xlu0 %1533  ;;  %v3489_v40 = vpop.eup %3488 }
 0x45f   : > { %v1586_v11 = vsub.f32 %v1534_v21, %v1570_v28  ;;  %v1647_v57 = vmul.f32 %v3489_v40, %v4460_v44  ;;  %v1571_v28 = vmul.f32 %v1555_v1, %v4524_v38  ;;  %v1565_v21 = vmul.f32 %v1549_v25, %v4540_v46 }
 0x460   : > { %v1617_v10 = vadd.f32 1e-05, %v1601_v37  ;;  %3496 = vrsqrt.f32 %v1610_v30  ;;  %v1572_v37 = vmul.f32 %v1556_v45, %v4528_v41  ;;  %v1685_v8 = vadd.f32 %v4610_v53, %v1662_v43 }
 0x461   : > { %v1602_v36 = vmul.f32 0.03125, %v1586_v11  ;;  %v1670_v38 = vmul.f32 %v4598_v32, %v1647_v57  ;;  %v1557_v45 = vmul.f32 96.0, %v4556_v5 }
 0x462   : > { %v3491_v2 = vpop.eup %3490  ;;  %3498 = vrsqrt.f32 %v1617_v10  ;;  %v1520_v59 = vpop.xlane.xlu1 %1519 }
 0x463   : > { %v1640_v18 = vmul.f32 %v3491_v2, %v4470_v0  ;;  %v1579_v47 = vsub.f32 %v1520_v59, %v1563_v24  ;;  %v1618_v17 = vadd.f32 1e-05, %v1602_v36  ;;  %v1522_v39 = vpop.xlane.xlu0 %1521  ;;  %v1566_v24 = vmul.f32 %v1550_v60, %v4544_v55 }
 0x464   : > { %v1580_v56 = vsub.f32 %v1522_v39, %v1564_v9  ;;  %v1693_v39 = vadd.f32 %v4610_v53, %v1670_v38 }
 0x465   : > { %v1663_v15 = vmul.f32 %v4598_v32, %v1640_v18  ;;  %v1595_v30 = vmul.f32 0.03125, %v1579_v47  ;;  %3500 = vrsqrt.f32 %v1618_v17  ;;  %v1558_v18 = vmul.f32 96.0, %v4562_v31 }
 0x466   : > { %v3493_v0 = vpop.eup %3492  ;;  %v1536_v44 = vpop.xlane.xlu1 %1535  ;;  %v1596_v40 = vmul.f32 0.03125, %v1580_v56 }
 0x467   : > { %v1686_v11 = vadd.f32 %v4610_v53, %v1663_v15  ;;  %v1648_v10 = vmul.f32 %v3493_v0, %v4474_v22  ;;  %v1611_v1 = vadd.f32 1e-05, %v1595_v30  ;;  %v1587_v2 = vsub.f32 %v1536_v44, %v1571_v28  ;;  %v1538_v41 = vpop.xlane.xlu0 %1537 }
 0x468   : > { %v3495_v36 = vpop.eup %3494  ;;  %v1612_v59 = vadd.f32 1e-05, %v1596_v40  ;;  %v1588_v46 = vsub.f32 %v1538_v41, %v1572_v37  ;;  %v1573_v40 = vmul.f32 %v1557_v45, %v4556_v5 }
 0x469   : > { %v1701_v25 = vpack.c.bf16 %v1686_v11, %v1685_v8  ;;  %v1671_v43 = vmul.f32 %v4598_v32, %v1648_v10  ;;  %3502 = vrsqrt.f32 %v1611_v1  ;;  %v1603_v9 = vmul.f32 0.03125, %v1587_v2 }
 0x46a   : > { %v1641_v22 = vmul.f32 %v3495_v36, %v4486_v16  ;;  %v3497_v57 = vpop.eup %3496  ;;  %3504 = vrsqrt.f32 %v1612_v59  ;;  %v1524_v47 = vpop.xlane.xlu1 %1523  ;;  %v1604_v17 = vmul.f32 0.03125, %v1588_v46 }
 0x46b   : > { %3187 = vmatprep.mubr.bf16.mxu0 %v1701_v25  ;;  %v1694_v55 = vadd.f32 %v4610_v53, %v1671_v43  ;;  %v1619_v60 = vadd.f32 1e-05, %v1603_v9  ;;  %v1581_v28 = vsub.f32 %v1524_v47, %v1565_v21  ;;  %v1526_v56 = vpop.xlane.xlu0 %1525  ;;  %v1642_v37 = vmul.f32 %v3497_v57, %v4494_v14 }
 0x46c   : > { %v1664_v15 = vmul.f32 %v4598_v32, %v1641_v22  ;;  %v3499_v0 = vpop.eup %3498  ;;  %v1620_v30 = vadd.f32 1e-05, %v1604_v17  ;;  %v1582_v8 = vsub.f32 %v1526_v56, %v1566_v24  ;;  %v1574_v21 = vmul.f32 %v1558_v18, %v4562_v31 }
 0x46d   : > { %v1705_v16 = vpack.c.bf16 %v1694_v55, %v1693_v39  ;;  %3506 = vrsqrt.f32 %v1619_v60  ;;  %v1597_v44 = vmul.f32 0.03125, %v1581_v28  ;;  %v1665_v11 = vmul.f32 %v4598_v32, %v1642_v37 }
 0x46e   : > { %3508 = vrsqrt.f32 %v1620_v30  ;;  %v1540_v10 = vpop.xlane.xlu1 %1539  ;;  %v1598_v38 = vmul.f32 0.03125, %v1582_v8  ;;  %v1649_v14 = vmul.f32 %v3499_v0, %v4498_v6  ;;  %v1687_v24 = vadd.f32 %v4610_v53, %v1664_v15 }
 0x46f   : > { %3195 = vmatprep.mubr.bf16.mxu1 %v1705_v16  ;;  %v3501_v1 = vpop.eup %3500  ;;  %v1613_v2 = vadd.f32 1e-05, %v1597_v44  ;;  %v1589_v41 = vsub.f32 %v1540_v10, %v1573_v40  ;;  %v1688_v36 = vadd.f32 %v4610_v53, %v1665_v11 }
 0x470   : > { %v1614_v59 = vadd.f32 1e-05, %v1598_v38  ;;  %v1542_v46 = vpop.xlane.xlu0 %1541  ;;  %v1650_v5 = vmul.f32 %v3501_v1, %v4508_v33  ;;  %v1672_v45 = vmul.f32 %v4598_v32, %v1649_v14 }
 0x471   : > { %3510 = vrsqrt.f32 %v1613_v2  ;;  %v1605_v25 = vmul.f32 0.03125, %v1589_v41  ;;  %v1590_v43 = vsub.f32 %v1542_v46, %v1574_v21  ;;  %v1702_v31 = vpack.c.bf16 %v1688_v36, %v1687_v24 }
 0x472   : > { %3512 = vrsqrt.f32 %v1614_v59  ;;  %v1673_v6 = vmul.f32 %v4598_v32, %v1650_v5  ;;  %v1695_v47 = vadd.f32 %v4610_v53, %v1672_v45 }
 0x473   : > { %v3503_v9 = vpop.eup %3502  ;;  %v1621_v18 = vadd.f32 1e-05, %v1605_v25  ;;  %v1606_v22 = vmul.f32 0.03125, %v1590_v43  ;;  %3188 = vmatmul.mubr.bf16.vlgmr.msra.gmra.mrb[0].mxu0 %v1702_v31 }
 0x474   : > { %v3505_v57 = vpop.eup %3504  ;;  %v1696_v17 = vadd.f32 %v4610_v53, %v1673_v6  ;;  %v1643_v33 = vmul.f32 %v3503_v9, %v4518_v34 }
 0x475   : > { %3514 = vrsqrt.f32 %v1621_v18  ;;  %v1622_v39 = vadd.f32 1e-05, %v1606_v22  ;;  %v1644_v55 = vmul.f32 %v3505_v57, %v4522_v35 }
 0x476   : > { %v1706_v60 = vpack.c.bf16 %v1696_v17, %v1695_v47  ;;  %v1666_v28 = vmul.f32 %v4598_v32, %v1643_v33 }
 0x477   : > { %v3507_v56 = vpop.eup %3506  ;;  %3516 = vrsqrt.f32 %v1622_v39  ;;  %v1667_v37 = vmul.f32 %v4598_v32, %v1644_v55 }
 0x478   : > { %v3509_v15 = vpop.eup %3508  ;;  %3196 = vmatmul.mubr.bf16.vlgmr.msra.gmra.mrb[0].mxu1 %v1706_v60  ;;  %v1651_v0 = vmul.f32 %v3507_v56, %v4534_v63  ;;  %v1689_v30 = vadd.f32 %v4610_v53, %v1666_v28 }
 0x479   : > { %v1690_v8 = vadd.f32 %v4610_v53, %v1667_v37  ;;  %v1652_v34 = vmul.f32 %v3509_v15, %v4538_v58 }
 0x47a   : > { %v1674_v16 = vmul.f32 %v4598_v32, %v1651_v0 }
 0x47b   : > { %v3511_v35 = vpop.eup %3510  ;;  %v1703_v44 = vpack.c.bf16 %v1690_v8, %v1689_v30  ;;  %v1675_v40 = vmul.f32 %v4598_v32, %v1652_v34 }
 0x47c   : > { %v3513_v11 = vpop.eup %3512  ;;  %v1645_v10 = vmul.f32 %v3511_v35, %v4550_v52  ;;  %v1697_v38 = vadd.f32 %v4610_v53, %v1674_v16 }
 0x47d   : > { %3191 = vmatprep.mubr.bf16.mxu0 %v1703_v44  ;;  %v1698_v63 = vadd.f32 %v4610_v53, %v1675_v40  ;;  %v1646_v21 = vmul.f32 %v3513_v11, %v4554_v54 }
 0x47e   : > { %v1668_v14 = vmul.f32 %v4598_v32, %v1645_v10 }
 0x47f   : > { %v3515_v1 = vpop.eup %3514  ;;  %v1707_v58 = vpack.c.bf16 %v1698_v63, %v1697_v38  ;;  %v1669_v2 = vmul.f32 %v4598_v32, %v1646_v21 }
 0x480   : > { %v1653_v41 = vmul.f32 %v3515_v1, %v4566_v23  ;;  %v1691_v36 = vadd.f32 %v4610_v53, %v1668_v14 }
 0x481   : > { %v3517_v24 = vpop.eup %3516  ;;  %3199 = vmatprep.mubr.bf16.mxu1 %v1707_v58  ;;  %v1692_v52 = vadd.f32 %v4610_v53, %v1669_v2 }
 0x482   : > { %v1654_v59 = vmul.f32 %v3517_v24, %v4572_v29  ;;  %v1676_v46 = vmul.f32 %v4598_v32, %v1653_v41 }
 0x483   : > { %v1704_v5 = vpack.c.bf16 %v1692_v52, %v1691_v36 }
 0x484   : > { %v1677_v54 = vmul.f32 %v4598_v32, %v1654_v59  ;;  %v1699_v45 = vadd.f32 %v4610_v53, %v1676_v46 }
 0x485   : > { %3192 = vmatmul.mubr.bf16.gmra.mrb[4].mxu0 %v1704_v5 }
 0x486   : > { %v1700_v25 = vadd.f32 %v4610_v53, %v1677_v54 }
 0x488   : > { %v1708_v43 = vpack.c.bf16 %v1700_v25, %v1699_v45 }
 0x48a   : > { %3200 = vmatmul.mubr.bf16.gmra.mrb[4].mxu1 %v1708_v43 }
 0x546   : > { %v3189_v23 = vpop.f32.mrb[0].mxu0 }
 0x547   : > { %v1807_v31 = vpop.f32.mrb[1].mxu0  ;;  %v1872_v9 = vmul.f32 %v3189_v23, %v4200_v13 }
 0x548   : > { %v3190_v6 = vpop.f32.mrb[2].mxu0  ;;  %v1870_v22 = vmul.f32 %v1807_v31, %v4169_v50 }
 0x549   : > { %v1873_v18 = vmul.f32 %v3190_v6, %v4198_v12  ;;  %v1810_v29 = vpop.f32.mrb[3].mxu0 }
 0x54a   : > { %v1871_v57 = vmul.f32 %v1810_v29, %v4183_v62 }
 0x54b   : > { %v1887_v32 = vpack.c.bf16 %v1873_v18, %v1872_v9  ;;  %v3197_v47 = vpop.f32.mrb[0].mxu1 }
 0x54c   : > { %v1886_v17 = vpack.c.bf16 %v1871_v57, %v1870_v22  ;;  %v1839_v33 = vpop.f32.mrb[1].mxu1  ;;  %v1880_v39 = vmul.f32 %v3197_v47, %v4225_v42 }
 0x54d   : > { %1895 = vst [vmem:[#allocation2 + $0x8] sm:$0xff] %v1887_v32  ;;  %v3198_v53 = vpop.f32.mrb[2].mxu1  ;;  %v1878_v13 = vmul.f32 %v1839_v33, %v4167_v49 }
 0x54e   : > { %1894 = vst [vmem:[#allocation2] sm:$0xff] %v1886_v17  ;;  %v1881_v55 = vmul.f32 %v3198_v53, %v4223_v26  ;;  %v1842_v60 = vpop.f32.mrb[3].mxu1 }
 0x54f   : > { %v1879_v12 = vmul.f32 %v1842_v60, %v4181_v61 }
 0x550   : > { %v1891_v28 = vpack.c.bf16 %v1881_v55, %v1880_v39 }
 0x551   : > { %v1890_v50 = vpack.c.bf16 %v1879_v12, %v1878_v13 }
 0x552   : > { %1899 = vst [vmem:[#allocation2 + $0x28] sm:$0xff] %v1891_v28 }
 0x553   : > { %1898 = vst [vmem:[#allocation2 + $0x20] sm:$0xff] %v1890_v50 }
 0x558   : > { %v3193_v62 = vpop.f32.mrb[4].mxu0 }
 0x559   : > { %v1823_v56 = vpop.f32.mrb[5].mxu0  ;;  %v1876_v15 = vmul.f32 %v3193_v62, %v4297_v51 }
 0x55a   : > { %v3194_v37 = vpop.f32.mrb[6].mxu0  ;;  %v1874_v42 = vmul.f32 %v1823_v56, %v4252_v4 }
 0x55b   : > { %v1877_v0 = vmul.f32 %v3194_v37, %v4295_v48  ;;  %v1826_v30 = vpop.f32.mrb[7].mxu0 }
 0x55c   : > { %v1875_v26 = vmul.f32 %v1826_v30, %v4250_v3 }
 0x55d   : > { %v1889_v8 = vpack.c.bf16 %v1877_v0, %v1876_v15  ;;  %v3201_v49 = vpop.f32.mrb[4].mxu1 }
 0x55e   : > { %v1888_v34 = vpack.c.bf16 %v1875_v26, %v1874_v42  ;;  %v1855_v61 = vpop.f32.mrb[5].mxu1  ;;  %v1884_v35 = vmul.f32 %v3201_v49, %v4317_v27 }
 0x55f   : > { %1897 = vst [vmem:[#allocation2 + $0x18] sm:$0xff] %v1889_v8  ;;  %v3202_v16 = vpop.f32.mrb[6].mxu1  ;;  %v1882_v51 = vmul.f32 %v1855_v61, %v4269_v20 }
 0x560   : > { %1896 = vst [vmem:[#allocation2 + $0x10] sm:$0xff] %v1888_v34  ;;  %v1885_v44 = vmul.f32 %v3202_v16, %v4315_v7  ;;  %v1858_v40 = vpop.f32.mrb[7].mxu1 }
 0x561   : > { %v1883_v48 = vmul.f32 %v1858_v40, %v4267_v19 }
 0x562   : > { %v1893_v11 = vpack.c.bf16 %v1885_v44, %v1884_v35 }
 0x563   : > { %v1892_v4 = vpack.c.bf16 %v1883_v48, %v1882_v51 }
 0x564   : > { %1901 = vst [vmem:[#allocation2 + $0x38] sm:$0xff] %v1893_v11 }
 0x565   : > { %1900 = vst [vmem:[#allocation2 + $0x30] sm:$0xff] %v1892_v4 }
 0x566 PF: > { %v1950_v3 = vld [vmem:[#allocation2] sm:$0xff]  ;;  %v1951_v10 = vld [vmem:[#allocation2 + $0x8] sm:$0xff]  ;;  %v1953_v7 = vld [vmem:[#allocation2 + $0x18] sm:$0xff]  ;;  %vm3779_vm0 = vmmov (%p1075_p3), 0   ;;  %s4883_s15 = sld [smem:[#allocation21_spill]] (%p1075_p3)  ;;  %s4884_s13 = sld [smem:[#allocation20_spill]] (%p1075_p3) }
 0x567   : > { %3203 = vmatprep.subr.bf16.mxu0 %v1950_v3  ;;  %v3518_v38 = vld [vmem:[#allocation7] sm:$0xff]   ;;  %v1952_v63 = vld [vmem:[#allocation2 + $0x10] sm:$0xff]  ;;  %v1955_v19 = vld [vmem:[#allocation2 + $0x28] sm:$0xff] }
 0x568   : > { %3204 = vmatpush3.bf16.msra.mxu0 %v1950_v3  ;;  %3219 = vmatprep.mubr.bf16.mxu0 %v3518_v38  ;;  %v1954_v20 = vld [vmem:[#allocation2 + $0x20] sm:$0xff]  ;;  %v3519_v14 = vld [vmem:[#allocation7 + $0x8] sm:$0xff]   ;;  %v3520_v1 = vld [vmem:[#allocation7 + $0x10] sm:$0xff]  }
 0x569   : > { %3205 = vmatprep.subr.bf16.mxu0 %v1951_v10  ;;  %v3521_v58 = vld [vmem:[#allocation7 + $0x18] sm:$0xff]   ;;  %v3522_v2 = vld [vmem:[#allocation7 + $0x20] sm:$0xff]   ;;  %v3523_v41 = vld [vmem:[#allocation7 + $0x28] sm:$0xff]  }
 0x56a   : > { %v3524_v24 = vld [vmem:[#allocation7 + $0x30] sm:$0xff]   ;;  %v3525_v36 = vld [vmem:[#allocation7 + $0x38] sm:$0xff]   ;;  %v3526_v52 = vld [vmem:[#allocation7 + $0x40] sm:$0xff]  }
 0x56b   : > { %v1957_v21 = vld [vmem:[#allocation2 + $0x38] sm:$0xff]  ;;  %v3527_v59 = vld [vmem:[#allocation7 + $0x48] sm:$0xff]   ;;  %v3528_v46 = vld [vmem:[#allocation7 + $0x50] sm:$0xff]  }
 0x56c   : > { %3206 = vmatpush3.bf16.msra.mxu0 %v1951_v10  ;;  %v1956_v27 = vld [vmem:[#allocation2 + $0x30] sm:$0xff]  ;;  %v3529_v5 = vld [vmem:[#allocation7 + $0x58] sm:$0xff]   ;;  %v3530_v54 = vld [vmem:[#allocation7 + $0x60] sm:$0xff]  }
 0x56d   : > { %3207 = vmatprep.subr.bf16.mxu0 %v1952_v63  ;;  %v3531_v45 = vld [vmem:[#allocation7 + $0x68] sm:$0xff]   ;;  %v3532_v25 = vld [vmem:[#allocation7 + $0x70] sm:$0xff]   ;;  %v3533_v43 = vld [vmem:[#allocation7 + $0x78] sm:$0xff]  }
 0x56e   : > { %v3536_v23 = vld [vmem:[%s4850_s1 + $0x4] ss:$8 sps:$4 sm:$0xff]  }
 0x56f   : > { %2375 = vmatprep.mubr.bf16.mxu1 %v3536_v23 }
 0x570   : > { %3208 = vmatpush3.bf16.msra.mxu0 %v1952_v63 }
 0x571   : > { %3209 = vmatprep.subr.bf16.mxu0 %v1953_v7 }
 0x574   : > { %3210 = vmatpush3.bf16.msra.mxu0 %v1953_v7 }
 0x575   : > { %3211 = vmatprep.subr.bf16.mxu0 %v1954_v20 }
 0x578   : > { %3212 = vmatpush3.bf16.msra.mxu0 %v1954_v20 }
 0x579   : > { %3213 = vmatprep.subr.bf16.mxu0 %v1955_v19 }
 0x57c   : > { %3214 = vmatpush3.bf16.msra.mxu0 %v1955_v19 }
 0x57d   : > { %3215 = vmatprep.subr.bf16.mxu0 %v1956_v27 }
 0x580   : > { %3216 = vmatpush3.bf16.msra.mxu0 %v1956_v27 }
 0x581   : > { %3217 = vmatprep.subr.bf16.mxu0 %v1957_v21 }
 0x584   : > { %3218 = vmatpush3.bf16.msra.mxu0 %v1957_v21 }
 0x587   : > { %3220 = vmatmul.mubr.bf16.vlgmr.msra.gmra.mrb[0].mxu0 %v3519_v14  ;;  %v3534_v14 = vld [vmem:[%s4850_s1] ss:$8 sps:$4 sm:$0xff]  }
 0x588   : > { %3223 = vmatprep.mubr.bf16.mxu0 %v3520_v1  ;;  %v3537_v1 = vld [vmem:[%s4850_s1 + $0x14] ss:$8 sps:$4 sm:$0xff]  }
 0x58f   : > { %3224 = vmatmul.mubr.bf16.gmra.mrb[4].mxu0 %v3521_v58  ;;  %v3539_v58 = vld [vmem:[%s4850_s1 + $0x10] ss:$8 sps:$4 sm:$0xff]  }
 0x590   : > { %3227 = vmatprep.mubr.bf16.mxu0 %v3522_v2  ;;  %v3540_v2 = vld [vmem:[%s4850_s1 + $0x24] ss:$8 sps:$4 sm:$0xff]  }
 0x597   : > { %3228 = vmatmul.mubr.bf16.gmra.mrb[8].mxu0 %v3523_v41  ;;  %v3542_v41 = vld [vmem:[%s4850_s1 + $0x20] ss:$8 sps:$4 sm:$0xff]  }
 0x598   : > { %3231 = vmatprep.mubr.bf16.mxu0 %v3524_v24  ;;  %v3543_v24 = vld [vmem:[%s4850_s1 + $0x34] ss:$8 sps:$4 sm:$0xff]  }
 0x59f   : > { %3232 = vmatmul.mubr.bf16.gmra.mrb[12].mxu0 %v3525_v36  ;;  %v3545_v36 = vld [vmem:[%s4850_s1 + $0x30] ss:$8 sps:$4 sm:$0xff]  }
 0x5a0   : > { %3235 = vmatprep.mubr.bf16.mxu0 %v3526_v52  ;;  %v3546_v52 = vld [vmem:[%s4850_s1 + $0x44] ss:$8 sps:$4 sm:$0xff]  }
 0x5a7   : > { %3236 = vmatmul.mubr.bf16.gmra.mrb[16].mxu0 %v3527_v59  ;;  %v3548_v59 = vld [vmem:[%s4850_s1 + $0x40] ss:$8 sps:$4 sm:$0xff]  }
 0x5a8   : > { %3239 = vmatprep.mubr.bf16.mxu0 %v3528_v46  ;;  %v3549_v46 = vld [vmem:[%s4850_s1 + $0x54] ss:$8 sps:$4 sm:$0xff]  }
 0x5af   : > { %3240 = vmatmul.mubr.bf16.gmra.mrb[20].mxu0 %v3529_v5  ;;  %v3551_v5 = vld [vmem:[%s4850_s1 + $0x50] ss:$8 sps:$4 sm:$0xff]  }
 0x5b0   : > { %3243 = vmatprep.mubr.bf16.mxu0 %v3530_v54  ;;  %v3552_v54 = vld [vmem:[%s4850_s1 + $0x64] ss:$8 sps:$4 sm:$0xff]  }
 0x5b7   : > { %3244 = vmatmul.mubr.bf16.gmra.mrb[24].mxu0 %v3531_v45  ;;  %v3554_v45 = vld [vmem:[%s4850_s1 + $0x60] ss:$8 sps:$4 sm:$0xff]  }
 0x5b8   : > { %3247 = vmatprep.mubr.bf16.mxu0 %v3532_v25  ;;  %v3555_v25 = vld [vmem:[%s4850_s1 + $0x74] ss:$8 sps:$4 sm:$0xff]  }
 0x5bf   : > { %3248 = vmatmul.mubr.bf16.gmra.mrb[28].mxu0 %v3533_v43  ;;  %v3557_v43 = vld [vmem:[%s4850_s1 + $0x70] ss:$8 sps:$4 sm:$0xff]  }
 0x65a   : > { %v3221_v31 = vpop.f32.mrb[0].mxu0 }
 0x65b   : > { %v2088_v6 = vpop.f32.mrb[1].mxu0 }
 0x65c   : > { %v3222_v9 = vpop.f32.mrb[2].mxu0 }
 0x65d   : > { %v2248_v18 = vpack.c.bf16 %v3222_v9, %v3221_v31  ;;  %v2091_v29 = vpop.f32.mrb[3].mxu0  ;;  %v2215_v31 = vld [vmem:[#allocation3] sm:$0xff] }
 0x65e   : > { %v2247_v22 = vpack.c.bf16 %v2091_v29, %v2088_v6  ;;  %v2216_v29 = vld [vmem:[#allocation3 + $0x8] sm:$0xff] }
 0x662   : > { %v3225_v57 = vpop.f32.mrb[4].mxu0 }
 0x663   : > { %v2104_v32 = vpop.f32.mrb[5].mxu0 }
 0x664   : > { %v3226_v47 = vpop.f32.mrb[6].mxu0 }
 0x665   : > { %v2250_v17 = vpack.c.bf16 %v3226_v47, %v3225_v57  ;;  %v2107_v33 = vpop.f32.mrb[7].mxu0 }
 0x666   : > { %v2249_v53 = vpack.c.bf16 %v2107_v33, %v2104_v32  ;;  %v2217_v33 = vld [vmem:[#allocation3 + $0x10] sm:$0xff] }
 0x66a   : > { %v3229_v39 = vpop.f32.mrb[8].mxu0 }
 0x66b   : > { %v2120_v55 = vpop.f32.mrb[9].mxu0 }
 0x66c   : > { %v3230_v60 = vpop.f32.mrb[10].mxu0 }
 0x66d   : > { %v2252_v13 = vpack.c.bf16 %v3230_v60, %v3229_v39  ;;  %v2123_v12 = vpop.f32.mrb[11].mxu0  ;;  %v2218_v60 = vld [vmem:[#allocation3 + $0x18] sm:$0xff] }
 0x66e   : > { %v2251_v28 = vpack.c.bf16 %v2123_v12, %v2120_v55 }
 0x672   : > { %v3233_v50 = vpop.f32.mrb[12].mxu0 }
 0x673   : > { %v2136_v62 = vpop.f32.mrb[13].mxu0 }
 0x674   : > { %v3234_v56 = vpop.f32.mrb[14].mxu0 }
 0x675   : > { %v2254_v37 = vpack.c.bf16 %v3234_v56, %v3233_v50  ;;  %v2139_v15 = vpop.f32.mrb[15].mxu0  ;;  %v2219_v56 = vld [vmem:[#allocation3 + $0x20] sm:$0xff] }
 0x676   : > { %v2253_v0 = vpack.c.bf16 %v2139_v15, %v2136_v62 }
 0x67a   : > { %v3237_v30 = vpop.f32.mrb[16].mxu0 }
 0x67b   : > { %v2152_v42 = vpop.f32.mrb[17].mxu0 }
 0x67c   : > { %v3238_v26 = vpop.f32.mrb[18].mxu0 }
 0x67d   : > { %v2256_v8 = vpack.c.bf16 %v3238_v26, %v3237_v30  ;;  %v2155_v49 = vpop.f32.mrb[19].mxu0  ;;  %v2220_v30 = vld [vmem:[#allocation3 + $0x28] sm:$0xff] }
 0x67e   : > { %v2255_v34 = vpack.c.bf16 %v2155_v49, %v2152_v42 }
 0x680   : > { %3026 = vmatprep.subr.bf16.mxu1 %v2255_v34 }
 0x681   : > { %3027 = vmatpush3.bf16.msra.mxu1 %v2247_v22 }
 0x682   : > { %v3241_v61 = vpop.f32.mrb[20].mxu0  ;;  %3028 = vmatprep.subr.bf16.mxu1 %v2256_v8 }
 0x683   : > { %v2168_v16 = vpop.f32.mrb[21].mxu0 }
 0x684   : > { %v3242_v35 = vpop.f32.mrb[22].mxu0 }
 0x685   : > { %v2258_v44 = vpack.c.bf16 %v3242_v35, %v3241_v61  ;;  %v2171_v40 = vpop.f32.mrb[23].mxu0  ;;  %3029 = vmatpush3.bf16.msra.mxu1 %v2248_v18  ;;  %v2221_v61 = vld [vmem:[#allocation3 + $0x30] sm:$0xff] }
 0x686   : > { %v2257_v51 = vpack.c.bf16 %v2171_v40, %v2168_v16  ;;  %v2222_v40 = vld [vmem:[#allocation3 + $0x38] sm:$0xff] }
 0x688   : > { %3030 = vmatprep.subr.bf16.mxu1 %v2257_v51 }
 0x689   : > { %3031 = vmatpush3.bf16.msra.mxu1 %v2249_v53 }
 0x68a   : > { %v3245_v48 = vpop.f32.mrb[24].mxu0  ;;  %3032 = vmatprep.subr.bf16.mxu1 %v2258_v44 }
 0x68b   : > { %v2184_v11 = vpop.f32.mrb[25].mxu0 }
 0x68c   : > { %v3246_v4 = vpop.f32.mrb[26].mxu0 }
 0x68d   : > { %v2260_v3 = vpack.c.bf16 %v3246_v4, %v3245_v48  ;;  %v2187_v10 = vpop.f32.mrb[27].mxu0  ;;  %3033 = vmatpush3.bf16.msra.mxu1 %v2250_v17 }
 0x68e   : > { %v2259_v38 = vpack.c.bf16 %v2187_v10, %v2184_v11  ;;  %v2223_v10 = vld [vmem:[#allocation3 + $0x40] sm:$0xff] }
 0x690   : > { %3034 = vmatprep.subr.bf16.mxu1 %v2259_v38 }
 0x691   : > { %3035 = vmatpush3.bf16.msra.mxu1 %v2251_v28 }
 0x692   : > { %v3249_v63 = vpop.f32.mrb[28].mxu0  ;;  %3036 = vmatprep.subr.bf16.mxu1 %v2260_v3 }
 0x693   : > { %v2200_v7 = vpop.f32.mrb[29].mxu0 }
 0x694   : > { %v3250_v20 = vpop.f32.mrb[30].mxu0 }
 0x695   : > { %v2262_v19 = vpack.c.bf16 %v3250_v20, %v3249_v63  ;;  %v2203_v27 = vpop.f32.mrb[31].mxu0  ;;  %3037 = vmatpush3.bf16.msra.mxu1 %v2252_v13  ;;  %v2224_v20 = vld [vmem:[#allocation3 + $0x48] sm:$0xff] }
 0x696   : > { %v2261_v21 = vpack.c.bf16 %v2203_v27, %v2200_v7 }
 0x698   : > { %3038 = vmatprep.subr.bf16.mxu1 %v2261_v21 }
 0x699   : > { %3039 = vmatpush3.bf16.msra.mxu1 %v2253_v0 }
 0x69a   : > { %3040 = vmatprep.subr.bf16.mxu1 %v2262_v19 }
 0x69d   : > { %3041 = vmatpush3.bf16.msra.mxu1 %v2254_v37 }
 0x6a0   : > { %2376 = vmatmul.mubr.bf16.vlgmr.msra.gmra.mrb[0].mxu1 %v3534_v14 }
 0x6a1   : > { %2383 = vmatprep.mubr.bf16.mxu1 %v3537_v1 }
 0x6a8   : > { %2384 = vmatmul.mubr.bf16.gmra.mrb[4].mxu1 %v3539_v58  ;;  %v2225_v58 = vld [vmem:[#allocation3 + $0x50] sm:$0xff] }
 0x6a9   : > { %2391 = vmatprep.mubr.bf16.mxu1 %v3540_v2 }
 0x6b0   : > { %2392 = vmatmul.mubr.bf16.gmra.mrb[8].mxu1 %v3542_v41 }
 0x6b1   : > { %2399 = vmatprep.mubr.bf16.mxu1 %v3543_v24 }
 0x6b8   : > { %2400 = vmatmul.mubr.bf16.gmra.mrb[12].mxu1 %v3545_v36  ;;  %v2226_v36 = vld [vmem:[#allocation3 + $0x58] sm:$0xff] }
 0x6b9   : > { %2407 = vmatprep.mubr.bf16.mxu1 %v3546_v52 }
 0x6c0   : > { %2408 = vmatmul.mubr.bf16.gmra.mrb[16].mxu1 %v3548_v59 }
 0x6c1   : > { %2415 = vmatprep.mubr.bf16.mxu1 %v3549_v46 }
 0x6c8   : > { %2416 = vmatmul.mubr.bf16.gmra.mrb[20].mxu1 %v3551_v5 }
 0x6c9   : > { %2423 = vmatprep.mubr.bf16.mxu1 %v3552_v54 }
 0x6d0   : > { %2424 = vmatmul.mubr.bf16.gmra.mrb[24].mxu1 %v3554_v45  ;;  %v2227_v45 = vld [vmem:[#allocation3 + $0x60] sm:$0xff] }
 0x6d1   : > { %2431 = vmatprep.mubr.bf16.mxu1 %v3555_v25 }
 0x6d8   : > { %2432 = vmatmul.mubr.bf16.gmra.mrb[28].mxu1 %v3557_v43 }
 0x773   : > { %v3042_v23 = vpop.f32.mrb[0].mxu1 }
 0x774   : > { %v3043_v6 = vpop.f32.mrb[1].mxu1 }
 0x775   : > { %v3044_v9 = vadd.f32 %v3043_v6, %v3042_v23  ;;  %v3045_v18 = vpop.f32.mrb[2].mxu1 }
 0x776   : > { %v3046_v22 = vpop.f32.mrb[3].mxu1 }
 0x777   : > { %v2440_v57 = vadd.f32 %v3044_v9, %v2215_v31  ;;  %v3047_v32 = vadd.f32 %v3046_v22, %v3045_v18  ;;  %v2228_v31 = vld [vmem:[#allocation3 + $0x68] sm:$0xff] }
 0x779   : > { %2456 = vst [vmem:[#allocation3] sm:$0xff] %v2440_v57  ;;  %v2441_v47 = vadd.f32 %v3047_v32, %v2216_v29  ;;  %v2229_v57 = vld [vmem:[#allocation3 + $0x70] sm:$0xff] }
 0x77b   : > { %2457 = vst [vmem:[#allocation3 + $0x8] sm:$0xff] %v2441_v47  ;;  %v3048_v17 = vpop.f32.mrb[4].mxu1 }
 0x77c   : > { %v3049_v53 = vpop.f32.mrb[5].mxu1 }
 0x77d   : > { %v3050_v39 = vadd.f32 %v3049_v53, %v3048_v17  ;;  %v3051_v55 = vpop.f32.mrb[6].mxu1 }
 0x77e   : > { %v3052_v13 = vpop.f32.mrb[7].mxu1 }
 0x77f   : > { %v2442_v12 = vadd.f32 %v3050_v39, %v2217_v33  ;;  %v3053_v28 = vadd.f32 %v3052_v13, %v3051_v55  ;;  %v2230_v33 = vld [vmem:[#allocation3 + $0x78] sm:$0xff]  ;;  %v2476_v13 = vld [vmem:[%s4853_s4 + $0x10] sm:$0xff] (%p1075_p3) }
 0x781   : > { %2458 = vst [vmem:[#allocation3 + $0x10] sm:$0xff] %v2442_v12  ;;  %v2443_v50 = vadd.f32 %v3053_v28, %v2218_v60  ;;  %v2474_v12 = vld [vmem:[%s4853_s4] sm:$0xff] (%p1075_p3)  ;;  %v3777_v28 = vmov (%p1075_p3), 0  }
 0x782   : > { %3559 = vset.pattern.permute.xlu1 (%p1075_p3), %v3777_v28  ;;  %3558 = vset.pattern.permute.xlu0 (%p1075_p3), %v3777_v28 }
 0x783   : > { %2459 = vst [vmem:[#allocation3 + $0x18] sm:$0xff] %v2443_v50  ;;  %v3054_v62 = vpop.f32.mrb[8].mxu1  ;;  %2518 = vperm.xlu1 (%p1075_p3), %3559, %v2476_v13   ;;  %2508 = vperm.xlu0 (%p1075_p3), %3558, %v2474_v12   ;;  %v2477_v50 = vld [vmem:[%s4853_s4 + $0x18] sm:$0xff] (%p1075_p3)  ;;  %v2606_v13 = vld [vmem:[#allocation2 + $0x20] sm:$0xff] (%p1075_p3) }
 0x784   : > { %v3055_v37 = vpop.f32.mrb[9].mxu1 }
 0x785   : > { %v3056_v15 = vadd.f32 %v3055_v37, %v3054_v62  ;;  %v3057_v0 = vpop.f32.mrb[10].mxu1  ;;  %v2475_v62 = vld [vmem:[%s4853_s4 + $0x8] sm:$0xff] (%p1075_p3)  ;;  %v2478_v37 = vld [vmem:[%s4853_s4 + $0x20] sm:$0xff] (%p1075_p3) }
 0x786   : > { %v3058_v42 = vpop.f32.mrb[11].mxu1 }
 0x787   : > { %v2444_v26 = vadd.f32 %v3056_v15, %v2219_v56  ;;  %v3059_v8 = vadd.f32 %v3058_v42, %v3057_v0  ;;  %2523 = vperm.xlu1 (%p1075_p3), %3559, %v2477_v50   ;;  %2513 = vperm.xlu0 (%p1075_p3), %3558, %v2475_v62   ;;  %v2479_v56 = vld [vmem:[%s4853_s4 + $0x28] sm:$0xff] (%p1075_p3)  ;;  %v2481_v15 = vld [vmem:[%s4853_s4 + $0x38] sm:$0xff] (%p1075_p3)  ;;  %v2480_v0 = vld [vmem:[%s4853_s4 + $0x30] sm:$0xff] (%p1075_p3) }
 0x788   : > { %v2482_v42 = vld [vmem:[%s4853_s4 + $0x40] sm:$0xff] (%p1075_p3) }
 0x789   : > { %2460 = vst [vmem:[#allocation3 + $0x20] sm:$0xff] %v2444_v26  ;;  %v2445_v49 = vadd.f32 %v3059_v8, %v2220_v30  ;;  %v2483_v30 = vld [vmem:[%s4853_s4 + $0x48] sm:$0xff] (%p1075_p3)  ;;  %v3778_v26 = vmov (%p1075_p3), 0.0|0.0   ;;  %v2485_v8 = vld [vmem:[%s4853_s4 + $0x58] sm:$0xff] (%p1075_p3) }
 0x78a   : > { %3286 = vmatprep.subr.bf16.mxu0 (%p1075_p3), %v3778_v26 }
 0x78b   : > { %2461 = vst [vmem:[#allocation3 + $0x28] sm:$0xff] %v2445_v49  ;;  %v3060_v34 = vpop.f32.mrb[12].mxu1  ;;  %2533 = vperm.xlu1 (%p1075_p3), %3559, %v2479_v56   ;;  %2528 = vperm.xlu0 (%p1075_p3), %3558, %v2478_v37   ;;  %v2484_v49 = vld [vmem:[%s4853_s4 + $0x50] sm:$0xff] (%p1075_p3) }
 0x78c   : > { %v3061_v16 = vpop.f32.mrb[13].mxu1 }
 0x78d   : > { %v3062_v35 = vadd.f32 %v3061_v16, %v3060_v34  ;;  %v3063_v44 = vpop.f32.mrb[14].mxu1  ;;  %v2487_v34 = vld [vmem:[%s4853_s4 + $0x68] sm:$0xff] (%p1075_p3)  ;;  %v2489_v16 = vld [vmem:[%s4853_s4 + $0x78] sm:$0xff] (%p1075_p3) }
 0x78e   : > { %v3064_v51 = vpop.f32.mrb[15].mxu1 }
 0x78f   : > { %v2446_v48 = vadd.f32 %v3062_v35, %v2221_v61  ;;  %v3065_v11 = vadd.f32 %v3064_v51, %v3063_v44  ;;  %2543 = vperm.xlu1 (%p1075_p3), %3559, %v2481_v15   ;;  %2538 = vperm.xlu0 (%p1075_p3), %3558, %v2480_v0   ;;  %v2486_v61 = vld [vmem:[%s4853_s4 + $0x60] sm:$0xff] (%p1075_p3)  ;;  %v2488_v35 = vld [vmem:[%s4853_s4 + $0x70] sm:$0xff] (%p1075_p3)  ;;  %v3780_v44 = vmov (%p1075_p3), 0.0   ;;  %v2603_v51 = vld [vmem:[#allocation2 + $0x8] sm:$0xff] (%p1075_p3) }
 0x790   : > { %3283 = vmatprep.mubr.msk.f32.mxu0 (%p1075_p3), %vm3779_vm0, %v3780_v44 }
 0x791   : > { %2462 = vst [vmem:[#allocation3 + $0x30] sm:$0xff] %v2446_v48  ;;  %v2447_v4 = vadd.f32 %v3065_v11, %v2222_v40  ;;  %v2602_v40 = vld [vmem:[#allocation2] sm:$0xff] (%p1075_p3) }
 0x792   : > { %v2610_v48 = vunpack.c.l.bf16 (%p1075_p3), %v2602_v40  ;;  %v2490_v11 = vld [vmem:[#allocation3] sm:$0xff] (%p1075_p3) }
 0x793   : > { %2463 = vst [vmem:[#allocation3 + $0x38] sm:$0xff] %v2447_v4  ;;  %v3066_v3 = vpop.f32.mrb[16].mxu1  ;;  %2553 = vperm.xlu1 (%p1075_p3), %3559, %v2483_v30   ;;  %2548 = vperm.xlu0 (%p1075_p3), %3558, %v2482_v42   ;;  %v2612_v4 = vunpack.c.l.bf16 (%p1075_p3), %v2603_v51 }
 0x794   : > { %v3067_v38 = vpop.f32.mrb[17].mxu1 }
 0x795   : > { %v3068_v63 = vadd.f32 %v3067_v38, %v3066_v3  ;;  %v3069_v7 = vpop.f32.mrb[18].mxu1  ;;  %v2492_v38 = vld [vmem:[#allocation3 + $0x10] sm:$0xff] (%p1075_p3) }
 0x796   : > { %v3070_v19 = vpop.f32.mrb[19].mxu1 }
 0x797   : > { %v2448_v27 = vadd.f32 %v3068_v63, %v2223_v10  ;;  %v3071_v21 = vadd.f32 %v3070_v19, %v3069_v7  ;;  %2563 = vperm.xlu1 (%p1075_p3), %3559, %v2485_v8   ;;  %2558 = vperm.xlu0 (%p1075_p3), %3558, %v2484_v49   ;;  %v2613_v63 = vunpack.c.h.bf16 (%p1075_p3), %v2603_v51  ;;  %v2493_v19 = vld [vmem:[#allocation3 + $0x18] sm:$0xff] (%p1075_p3)  ;;  %v2619_v8 = vunpack.c.h.bf16 (%p1075_p3), %v2606_v13 }
 0x799   : > { %2464 = vst [vmem:[#allocation3 + $0x40] sm:$0xff] %v2448_v27  ;;  %v2449_v14 = vadd.f32 %v3071_v21, %v2224_v20  ;;  %v2491_v27 = vld [vmem:[#allocation3 + $0x8] sm:$0xff] (%p1075_p3)  ;;  %v2611_v21 = vunpack.c.h.bf16 (%p1075_p3), %v2602_v40 }
 0x79b   : > { %2465 = vst [vmem:[#allocation3 + $0x48] sm:$0xff] %v2449_v14  ;;  %v3072_v1 = vpop.f32.mrb[20].mxu1  ;;  %2573 = vperm.xlu1 (%p1075_p3), %3559, %v2487_v34   ;;  %2568 = vperm.xlu0 (%p1075_p3), %3558, %v2486_v61   ;;  %v2604_v14 = vld [vmem:[#allocation2 + $0x10] sm:$0xff] (%p1075_p3) }
 0x79c   : > { %v3073_v2 = vpop.f32.mrb[21].mxu1 }
 0x79d   : > { %v3074_v41 = vadd.f32 %v3073_v2, %v3072_v1  ;;  %v3075_v24 = vpop.f32.mrb[22].mxu1 }
 0x79e   : > { %v3076_v52 = vpop.f32.mrb[23].mxu1 }
 0x79f   : > { %v2450_v59 = vadd.f32 %v3074_v41, %v2225_v58  ;;  %v3077_v46 = vadd.f32 %v3076_v52, %v3075_v24  ;;  %2583 = vperm.xlu1 (%p1075_p3), %3559, %v2489_v16   ;;  %2578 = vperm.xlu0 (%p1075_p3), %3558, %v2488_v35   ;;  %v2618_v16 = vunpack.c.l.bf16 (%p1075_p3), %v2606_v13  ;;  %v2607_v35 = vld [vmem:[#allocation2 + $0x28] sm:$0xff] (%p1075_p3) }
 0x7a0   : > { %v2498_v61 = vld [vmem:[#allocation3 + $0x40] sm:$0xff] (%p1075_p3) }
 0x7a1   : > { %2466 = vst [vmem:[#allocation3 + $0x50] sm:$0xff] %v2450_v59  ;;  %v2451_v5 = vadd.f32 %v3077_v46, %v2226_v36  ;;  %v2615_v59 = vunpack.c.h.bf16 (%p1075_p3), %v2604_v14 }
 0x7a2   : > { %v2499_v34 = vld [vmem:[#allocation3 + $0x48] sm:$0xff] (%p1075_p3) }
 0x7a3   : > { %2467 = vst [vmem:[#allocation3 + $0x58] sm:$0xff] %v2451_v5  ;;  %v3078_v54 = vpop.f32.mrb[24].mxu1 }
 0x7a4   : > { %v3079_v25 = vpop.f32.mrb[25].mxu1 }
 0x7a5   : > { %v3080_v43 = vadd.f32 %v3079_v25, %v3078_v54  ;;  %v3081_v23 = vpop.f32.mrb[26].mxu1  ;;  %v2495_v54 = vld [vmem:[#allocation3 + $0x28] sm:$0xff] (%p1075_p3)  ;;  %v2614_v25 = vunpack.c.l.bf16 (%p1075_p3), %v2604_v14  ;;  %v2608_v14 = vld [vmem:[#allocation2 + $0x30] sm:$0xff] (%p1075_p3) }
 0x7a6   : > { %v3082_v6 = vpop.f32.mrb[27].mxu1 }
 0x7a7   : > { %v2452_v9 = vadd.f32 %v3080_v43, %v2227_v45  ;;  %v3083_v18 = vadd.f32 %v3082_v6, %v3081_v23  ;;  %v2494_v45 = vld [vmem:[#allocation3 + $0x20] sm:$0xff] (%p1075_p3)  ;;  %v2605_v43 = vld [vmem:[#allocation2 + $0x18] sm:$0xff] (%p1075_p3) }
 0x7a8   : > { %v4784_v23 = vld [vmem:[%s4883_s15] ss:$0 sm:$0xff] (%p1075_p3) }
 0x7a9   : > { %2468 = vst [vmem:[#allocation3 + $0x60] sm:$0xff] %v2452_v9  ;;  %v2453_v29 = vadd.f32 %v3083_v18, %v2228_v31 }
 0x7ab   : > { %2469 = vst [vmem:[#allocation3 + $0x68] sm:$0xff] %v2453_v29  ;;  %v3084_v22 = vpop.f32.mrb[28].mxu1 }
 0x7ac   : > { %v3085_v32 = vpop.f32.mrb[29].mxu1 }
 0x7ad   : > { %v3086_v47 = vadd.f32 %v3085_v32, %v3084_v22  ;;  %v3087_v17 = vpop.f32.mrb[30].mxu1  ;;  %2473 = sbr.rel (!%p1075_p3) target bundleno = 2308 (0x904), region = 104 }
 0x7ae   : > { %v3088_v53 = vpop.f32.mrb[31].mxu1 }
 0x7af   : > { %v2454_v39 = vadd.f32 %v3086_v47, %v2229_v57  ;;  %v3089_v55 = vadd.f32 %v3088_v53, %v3087_v17  ;;  %v2617_v47 = vunpack.c.h.bf16 (%p1075_p3), %v2605_v43  ;;  %v2496_v53 = vld [vmem:[#allocation3 + $0x30] sm:$0xff] (%p1075_p3) }
 0x7b1   : > { %2470 = vst [vmem:[#allocation3 + $0x70] sm:$0xff] %v2454_v39  ;;  %v2455_v60 = vadd.f32 %v3089_v55, %v2230_v33  ;;  %v2497_v33 = vld [vmem:[#allocation3 + $0x38] sm:$0xff] (%p1075_p3)  ;;  %v2616_v39 = vunpack.c.l.bf16 (%p1075_p3), %v2605_v43  ;;  %v2502_v43 = vld [vmem:[#allocation3 + $0x60] sm:$0xff] (%p1075_p3) }
 0x7b3   : > { %2471 = vst [vmem:[#allocation3 + $0x78] sm:$0xff] %v2455_v60 }
 0x7b8   : > { %v2504_v13 = vld [vmem:[#allocation3 + $0x70] sm:$0xff] }
 0x802   : > { %v2519_v3 = vpop.permute.xlu1 %2518  ;;  %v2509_v10 = vpop.permute.xlu0 %2508 }
 0x803   : > { %v2586_v7 = vmul.f32 %v2509_v10, %v2490_v11  ;;  %v2626_v20 = vmul.f32 %v2610_v48, %v2509_v10  ;;  %v2588_v1 = vmul.f32 %v2519_v3, %v2492_v38  ;;  %v2628_v58 = vmul.f32 %v2612_v4, %v2519_v3 }
 0x805   : > { %v2642_v46 = vadd.f32 %v2626_v20, %v2586_v7  ;;  %v2644_v31 = vadd.f32 %v2628_v58, %v2588_v1  ;;  %v2621_v7 = vunpack.c.h.bf16 %v2607_v35 }
 0x806   : > { %v2524_v2 = vpop.permute.xlu1 %2523  ;;  %v2514_v41 = vpop.permute.xlu0 %2513 }
 0x807   : > { %v2589_v24 = vmul.f32 %v2524_v2, %v2493_v19  ;;  %v2629_v36 = vmul.f32 %v2613_v63, %v2524_v2  ;;  %v2587_v52 = vmul.f32 %v2514_v41, %v2491_v27  ;;  %v2627_v5 = vmul.f32 %v2611_v21, %v2514_v41  ;;  %v2501_v19 = vld [vmem:[#allocation3 + $0x58] sm:$0xff]  ;;  %v2500_v27 = vld [vmem:[#allocation3 + $0x50] sm:$0xff] }
 0x808   : > { %v2665_v55 = vadd.f32 %v4784_v23, %v2642_v46  ;;  %v2667_v28 = vadd.f32 %v4784_v23, %v2644_v31  ;;  %v2620_v21 = vunpack.c.l.bf16 %v2607_v35  ;;  %v2622_v31 = vunpack.c.l.bf16 %v2608_v14 }
 0x809   : > { %v2645_v6 = vadd.f32 %v2629_v36, %v2589_v24  ;;  %v2643_v9 = vadd.f32 %v2627_v5, %v2587_v52 }
 0x80a   : > { %v2534_v18 = vpop.permute.xlu1 %2533  ;;  %v2529_v29 = vpop.permute.xlu0 %2528 }
 0x80b   : > { %v2591_v22 = vmul.f32 %v2534_v18, %v2495_v54  ;;  %v2631_v57 = vmul.f32 %v2615_v59, %v2534_v18  ;;  %v2590_v32 = vmul.f32 %v2529_v29, %v2494_v45  ;;  %v2630_v17 = vmul.f32 %v2614_v25, %v2529_v29  ;;  %v2503_v25 = vld [vmem:[#allocation3 + $0x68] sm:$0xff] }
 0x80c   : > { %v2666_v60 = vadd.f32 %v4784_v23, %v2643_v9  ;;  %v2668_v50 = vadd.f32 %v4784_v23, %v2645_v6  ;;  %v2623_v54 = vunpack.c.h.bf16 %v2608_v14  ;;  %v2609_v6 = vld [vmem:[#allocation2 + $0x38] sm:$0xff] }
 0x80d   : > { %v2647_v12 = vadd.f32 %v2631_v57, %v2591_v22  ;;  %v2646_v62 = vadd.f32 %v2630_v17, %v2590_v32 }
 0x80e   : > { %v2544_v56 = vpop.permute.xlu1 %2543  ;;  %v2539_v37 = vpop.permute.xlu0 %2538  ;;  %v3287_v15 = vpack.c.bf16 %v2666_v60, %v2665_v55  ;;  %v3290_v3 = vpack.c.bf16 %v2668_v50, %v2667_v28  ;;  %v2505_v60 = vld [vmem:[#allocation3 + $0x78] sm:$0xff] }
 0x80f   : > { %v2593_v0 = vmul.f32 %v2544_v56, %v2497_v33  ;;  %v2633_v30 = vmul.f32 %v2617_v47, %v2544_v56  ;;  %v2592_v42 = vmul.f32 %v2539_v37, %v2496_v53  ;;  %v2632_v49 = vmul.f32 %v2616_v39, %v2539_v37 }
 0x810   : > { %3288 = vmatpush3.bf16.msra.mxu0 %v3287_v15  ;;  %v2670_v44 = vadd.f32 %v4784_v23, %v2647_v12  ;;  %v2669_v40 = vadd.f32 %v4784_v23, %v2646_v62  ;;  %v2625_v39 = vunpack.c.h.bf16 %v2609_v6  ;;  %v2624_v12 = vunpack.c.l.bf16 %v2609_v6 }
 0x811   : > { %3289 = vmatprep.subr.bf16.mxu0 %v3778_v26  ;;  %v2649_v51 = vadd.f32 %v2633_v30, %v2593_v0  ;;  %v2648_v48 = vadd.f32 %v2632_v49, %v2592_v42 }
 0x812   : > { %v2554_v11 = vpop.permute.xlu1 %2553  ;;  %v2549_v4 = vpop.permute.xlu0 %2548  ;;  %v3293_v1 = vpack.c.bf16 %v2670_v44, %v2669_v40 }
 0x813   : > { %v2595_v10 = vmul.f32 %v2554_v11, %v2499_v34  ;;  %v2635_v38 = vmul.f32 %v2619_v8, %v2554_v11  ;;  %v2594_v63 = vmul.f32 %v2549_v4, %v2498_v61  ;;  %v2634_v20 = vmul.f32 %v2618_v16, %v2549_v4  ;;  %v2681_v4 = vld [vmem:[%s4884_s13] sm:$0xff] }
 0x814   : > { %3291 = vmatpush3.bf16.msra.mxu0 %v3290_v3  ;;  %v2672_v58 = vadd.f32 %v4784_v23, %v2649_v51  ;;  %v2671_v2 = vadd.f32 %v4784_v23, %v2648_v48 }
 0x815   : > { %3292 = vmatprep.subr.bf16.mxu0 %v3778_v26  ;;  %v2651_v41 = vadd.f32 %v2635_v38, %v2595_v10  ;;  %v2650_v24 = vadd.f32 %v2634_v20, %v2594_v63 }
 0x816   : > { %v2564_v36 = vpop.permute.xlu1 %2563  ;;  %v2559_v52 = vpop.permute.xlu0 %2558  ;;  %v3296_v47 = vpack.c.bf16 %v2672_v58, %v2671_v2 }
 0x817   : > { %v2597_v59 = vmul.f32 %v2564_v36, %v2501_v19  ;;  %v2637_v46 = vmul.f32 %v2621_v7, %v2564_v36  ;;  %v2596_v5 = vmul.f32 %v2559_v52, %v2500_v27  ;;  %v2636_v45 = vmul.f32 %v2620_v21, %v2559_v52 }
 0x818   : > { %3294 = vmatpush3.bf16.msra.mxu0 %v3293_v1  ;;  %v2674_v18 = vadd.f32 %v4784_v23, %v2651_v41  ;;  %v2673_v29 = vadd.f32 %v4784_v23, %v2650_v24 }
 0x819   : > { %v2653_v9 = vadd.f32 %v2637_v46, %v2597_v59  ;;  %3295 = vmatprep.subr.bf16.mxu0 %v3778_v26  ;;  %v2652_v22 = vadd.f32 %v2636_v45, %v2596_v5 }
 0x81a   : > { %v2574_v57 = vpop.permute.xlu1 %2573  ;;  %v2569_v32 = vpop.permute.xlu0 %2568  ;;  %v3299_v0 = vpack.c.bf16 %v2674_v18, %v2673_v29 }
 0x81b   : > { %v2599_v17 = vmul.f32 %v2574_v57, %v2503_v25  ;;  %v2639_v33 = vmul.f32 %v2623_v54, %v2574_v57  ;;  %v2598_v53 = vmul.f32 %v2569_v32, %v2502_v43  ;;  %v2638_v55 = vmul.f32 %v2622_v31, %v2569_v32 }
 0x81c   : > { %3297 = vmatpush3.bf16.msra.mxu0 %v3296_v47  ;;  %v2676_v28 = vadd.f32 %v4784_v23, %v2653_v9  ;;  %v2675_v50 = vadd.f32 %v4784_v23, %v2652_v22 }
 0x81d   : > { %3298 = vmatprep.subr.bf16.mxu0 %v3778_v26  ;;  %v2655_v62 = vadd.f32 %v2639_v33, %v2599_v17  ;;  %v2654_v56 = vadd.f32 %v2638_v55, %v2598_v53 }
 0x81e   : > { %v2584_v37 = vpop.permute.xlu1 %2583  ;;  %v2579_v15 = vpop.permute.xlu0 %2578  ;;  %v3302_v34 = vpack.c.bf16 %v2676_v28, %v2675_v50 }
 0x81f   : > { %v2601_v30 = vmul.f32 %v2584_v37, %v2505_v60  ;;  %v2641_v42 = vmul.f32 %v2625_v39, %v2584_v37  ;;  %v2600_v8 = vmul.f32 %v2579_v15, %v2504_v13  ;;  %v2640_v49 = vmul.f32 %v2624_v12, %v2579_v15 }
 0x820   : > { %3300 = vmatpush3.bf16.msra.mxu0 %v3299_v0  ;;  %v2678_v61 = vadd.f32 %v4784_v23, %v2655_v62  ;;  %v2677_v16 = vadd.f32 %v4784_v23, %v2654_v56 }
 0x821   : > { %3301 = vmatprep.subr.bf16.mxu0 %v3778_v26  ;;  %v2657_v35 = vadd.f32 %v2641_v42, %v2601_v30  ;;  %v2656_v44 = vadd.f32 %v2640_v49, %v2600_v8 }
 0x822   : > { %v3305_v48 = vpack.c.bf16 %v2678_v61, %v2677_v16 }
 0x823   : > { %v2680_v40 = vadd.f32 %v4784_v23, %v2657_v35  ;;  %v2679_v51 = vadd.f32 %v4784_v23, %v2656_v44 }
 0x824   : > { %3303 = vmatpush3.bf16.msra.mxu0 %v3302_v34 }
 0x825   : > { %3304 = vmatprep.subr.bf16.mxu0 %v3778_v26  ;;  %v3308_v11 = vpack.c.bf16 %v2680_v40, %v2679_v51 }
 0x828   : > { %3306 = vmatpush3.bf16.msra.mxu0 %v3305_v48 }
 0x829   : > { %3307 = vmatprep.subr.bf16.mxu0 %v3778_v26 }
 0x82c   : > { %3309 = vmatpush3.bf16.msra.mxu0 %v3308_v11 }
 0x82f   : > { %3284 = vmatmul.mubr.f32.vlgmr.msra.gmra.mrb[0].mxu0 %v2681_v4 }
 0x902   : > { %v2748_v3 = vpop.f32.mrb[0].mxu0 }
 0x903   : > { %2752 = vst [vmem:[#allocation13] sm:$0xff] %v2748_v3  ;;  %v3285_v10 = vpop.f32.mrb[1].mxu0 }
 0x904 PF: > { %s4885_s27 = sld [smem:[#allocation18_spill]]  ;;  %s3781_s12 = smov [#allocation13]  }
 0x905   : > { %s2760_s29 = sshll.u32 %s3781_s12, 4  ;;  %s2761_s29 = int_to_ptr.vmem [resolvable:$true] %s2760_s29 }
 0x906   : > { %s3700_s30 = scalar_lea.vmem %s2761_s29, 128  ;;  %p3707_p4 = scmp.lt.s32.totalorder %s2761_s29, %s2761_s29 }
 0x907   : > { %p3701_p13 = scmp.ne.s32.totalorder %s2761_s29, %s3700_s30  ;;  %p3708_p6 = scmp.lt.s32.totalorder %s3700_s30, %s3700_s30 }
 0x909   : > { %p3709_p8 = por %p3708_p6, %p3707_p4 }
 0x90a   : > { %s4886_s16 = sadd.s32 4294967295, %s4885_s27  }
 0x90b   : > { %p4814_p12 = scmp.eq.s32.totalorder %s4886_s16, 1 }
 0x90d   : > { %p3702_p0 = pnand %p3701_p13, %p4814_p12 }
 0x90f   : > { %p3703_p1 = pneg %p3702_p0 }
 0x911   : > { %p3710_p9 = pnand %p3709_p8, %p3703_p1 }
 0x913   : > { %3713 = shalt.err (!%p3710_p9)
}
 0x914   : > { %s4888_s14 = sld [smem:[#allocation22_spill]] }
 0x91a   : > { %s3714_s21 = scalar_lea.hbm %s4888_s14, 128 }
 0x91b   : > { %p3715_p10 = scmp.ne.s32.totalorder %s4888_s14, %s3714_s21  ;;  %p3720_p7 = scmp.lt.u32.totalorder %s3714_s21, %s4888_s14 }
 0x91d   : > { %p3716_p11 = pnand %p3715_p10, %p4814_p12 }
 0x91f   : > { %p3717_p2 = pneg %p3716_p11 }
 0x921   : > { %p3722_p5 = pnand %p3720_p7, %p3717_p2 }
 0x923   : > { %3725 = shalt.err (!%p3722_p5)
}
 0x924   : > { %3347 = dma.vmem_to_hbm [thread:$0]  (%p4814_p12), %s2761_s29, 128, %s4888_s14, [#allocation6]  }
 0x925   : > { %3751 = dma.done.wait (%p4814_p12), [#allocation6], 128  }
 0x926   : > { %3753 = vsyncadd (%p4814_p12), [#allocation6], 4294967168 }
 0x927 PF: > { %s4889_s3 = sld [smem:[#allocation18_spill]]  ;;  %s4890_s25 = smov %s3760_s26 }
 0x928   : > { %s4891_s26 = smov %s4893_s23 }
 0x92d   : > { %s27_s27 = sadd.s32 1, %s4889_s3  }
 0x92e   : > { %p24_p3 = scmp.ge.s32.totalorder %s27_s27, 4  }
 0x930   :  { %26 = sbr.rel (!%p24_p3) target bundleno = 10 (0xa), region = 133 }
 0x937   :  { %2773 = vsyncpa [#allocation5], 1 }
 0x938   :  { %2775 = vsyncpa [#allocation5 + $0x1], 1 }
 0x939   :  { %2776 = vsyncpa [#allocation8], 1 }
 0x93a   :  { %2777 = vsyncpa [#allocation11], 1 }
 0x93b   :  { %2778 = vsyncpa [#allocation6], 1 }
 0x93c   :  { %2780 = vsyncpa [#allocation6 + $0x1], 1 }

</bundles_post_ra>
